<compile_context>
chip_gen: v6e
topology: v6e:2x2x1
jax: 0.10.0
libtpu: 0.0.40
codegen_flags: <defaults>
</compile_context>

<pallas_src>
import functools
import math

import jax
import jax.numpy as jnp
from jax import lax
from jax.experimental import pallas as pl
from jax.experimental.pallas import tpu as pltpu


# ----------------------------- shared math -----------------------------------


def _layer_norm(v, gamma, beta, eps=1e-5):
    mu = jnp.mean(v, axis=-1, keepdims=True)
    d = v - mu
    var = jnp.mean(d * d, axis=-1, keepdims=True)
    return d * lax.rsqrt(var + eps) * gamma + beta


# ----------------------------- kernel -----------------------------------------


def _transformer_encoder_kernel(
    x_ref,       # (T, I)      this batch's rows of the flattened input
    pos_ref,     # (T, H)      positional encoding (resident)
    w_in_ref,    # (I, H)      input projection (resident)
    b_in_ref,    # (1, H)
    w_qkv_ref,   # (1, H, 3H)  this layer's fused in_proj (q|k|v), transposed
    b_qkv_ref,   # (1, 1, 3H)
    w_ao_ref,    # (1, H, H)   attention out_proj, transposed
    b_ao_ref,    # (1, 1, H)
    ln1_g_ref,   # (1, 1, H)
    ln1_b_ref,   # (1, 1, H)
    w_ff1_ref,   # (1, H, F)
    b_ff1_ref,   # (1, 1, F)
    w_ff2_ref,   # (1, F, H)
    b_ff2_ref,   # (1, 1, H)
    ln2_g_ref,   # (1, 1, H)
    ln2_b_ref,   # (1, 1, H)
    out_ref,     # (T, H)      this batch's output rows
    h_ref,       # (T, H) f32  running activation (persists across layer axis)
    ctx_ref,     # (T, H) f32  per-head attention context assembly
    *,
    hidden_dim: int,
    num_heads: int,
):
    H = hidden_dim
    hd = H // num_heads
    scale = 1.0 / math.sqrt(hd)
    layer = pl.program_id(1)

    # ---- layer 0 only: input projection + positional encoding -------------
    @pl.when(layer == 0)
    def _():
        x = x_ref[...].astype(jnp.float32)
        h_ref[...] = (
            jnp.dot(x, w_in_ref[...], preferred_element_type=jnp.float32)
            + b_in_ref[...]
            + pos_ref[...].astype(jnp.float32)
        )

    h = h_ref[...]

    # ---- self-attention: one fused QKV matmul over the block's T rows -----
    qkv = (
        jnp.dot(h, w_qkv_ref[0], preferred_element_type=jnp.float32)
        + b_qkv_ref[0]
    )
    q = qkv[:, 0 * H:1 * H] * scale      # fold 1/sqrt(hd) into q once
    k = qkv[:, 1 * H:2 * H]
    v = qkv[:, 2 * H:3 * H]

    # Per-head scores/context; each (T, hd) context tile is written straight
    # into the lane-aligned ctx scratch (no concatenates).
    for hh in range(num_heads):
        c0 = hh * hd
        qh = q[:, c0:c0 + hd]
        kh = k[:, c0:c0 + hd]
        vh = v[:, c0:c0 + hd]
        s = lax.dot_general(
            qh, kh, (((1,), (1,)), ((), ())),
            preferred_element_type=jnp.float32,
        )                                               # (T, T)
        s = s - jnp.max(s, axis=-1, keepdims=True)
        e = jnp.exp(s)
        p = e * pl.reciprocal(jnp.sum(e, axis=-1, keepdims=True), approx=True)
        ctx_ref[:, c0:c0 + hd] = jnp.dot(
            p, vh, preferred_element_type=jnp.float32
        )

    attn = (
        jnp.dot(ctx_ref[...], w_ao_ref[0], preferred_element_type=jnp.float32)
        + b_ao_ref[0]
    )

    # post-norm residual 1 (dropout = identity in eval mode)
    h = _layer_norm(h + attn, ln1_g_ref[0], ln1_b_ref[0])

    # ---- feed-forward: Linear(H, 4H) -> ReLU -> Linear(4H, H) -------------
    ff = (
        jnp.dot(h, w_ff1_ref[0], preferred_element_type=jnp.float32)
        + b_ff1_ref[0]
    )
    ff = jnp.maximum(ff, 0.0)
    ff = (
        jnp.dot(ff, w_ff2_ref[0], preferred_element_type=jnp.float32)
        + b_ff2_ref[0]
    )

    # post-norm residual 2
    h = _layer_norm(h + ff, ln2_g_ref[0], ln2_b_ref[0])
    h_ref[...] = h

    @pl.when(layer == pl.num_programs(1) - 1)
    def _():
        out_ref[...] = h.astype(out_ref.dtype)


# ----------------------------- wrapper -----------------------------------------


def transformer_encoder_forward(x, params, *, num_heads=4):
    """Matches TransformerEncoder.forward(x) (eval mode).

    x: (B, T, input_dim), batch_first like PyTorch. Returns (B, T, hidden_dim).
    """
    B, T, I = x.shape
    H = params["w_in"].shape[1]
    F = params["w_ff1"].shape[2]
    L = params["w_qkv"].shape[0]
    assert T <= params["pos"].shape[0], "sequence longer than pos_encoder"

    x2d = x.reshape(B * T, I)
    pos_t = params["pos"][:T]                      # (T, H), added in-kernel

    def resident(shape):
        return pl.BlockSpec(shape, lambda b, l, _n=len(shape): (0,) * _n)

    def per_batch(shape):
        return pl.BlockSpec(
            shape, lambda b, l, _n=len(shape): (b,) + (0,) * (_n - 1)
        )

    def per_layer(shape):
        return pl.BlockSpec(
            shape, lambda b, l, _n=len(shape): (l,) + (0,) * (_n - 1)
        )

    in_specs = [
        per_batch((T, I)),            # x          (one sequence per block)
        resident((T, H)),             # pos        (DMA'd once, stays resident)
        resident((I, H)),             # w_in
        resident((1, H)),             # b_in
        per_layer((1, H, 3 * H)),     # w_qkv      (streamed per layer)
        per_layer((1, 1, 3 * H)),     # b_qkv
        per_layer((1, H, H)),         # w_ao
        per_layer((1, 1, H)),         # b_ao
        per_layer((1, 1, H)),         # ln1_g
        per_layer((1, 1, H)),         # ln1_b
        per_layer((1, H, F)),         # w_ff1
        per_layer((1, 1, F)),         # b_ff1
        per_layer((1, F, H)),         # w_ff2
        per_layer((1, 1, H)),         # b_ff2
        per_layer((1, 1, H)),         # ln2_g
        per_layer((1, 1, H)),         # ln2_b
    ]

    out2d = pl.pallas_call(
        functools.partial(
            _transformer_encoder_kernel,
            hidden_dim=H,
            num_heads=num_heads,
        ),
        grid=(B, L),
        in_specs=in_specs,
        out_specs=per_batch((T, H)),
        out_shape=jax.ShapeDtypeStruct((B * T, H), x.dtype),
        scratch_shapes=[
            pltpu.VMEM((T, H), jnp.float32),   # running activation h
            pltpu.VMEM((T, H), jnp.float32),   # attention context assembly
        ],
        compiler_params=pltpu.CompilerParams(
            dimension_semantics=("parallel", "arbitrary"),
        ),
    )(
        x2d, pos_t,
        params["w_in"], params["b_in"],
        params["w_qkv"], params["b_qkv"],
        params["w_ao"], params["b_ao"],
        params["ln1_g"], params["ln1_b"],
        params["w_ff1"], params["b_ff1"],
        params["w_ff2"], params["b_ff2"],
        params["ln2_g"], params["ln2_b"],
    )
    return out2d.reshape(B, T, H)


# ----------------------------- pure-JAX reference -------------------------------


def transformer_encoder_ref(x, params, *, num_heads=4):
    B, T, I = x.shape
    H = params["w_in"].shape[1]
    L = params["w_qkv"].shape[0]
    hd = H // num_heads
    scale = 1.0 / math.sqrt(hd)

    h = x @ params["w_in"] + params["b_in"] + params["pos"][:T][None, :, :]
    for l in range(L):
        qkv = h @ params["w_qkv"][l] + params["b_qkv"][l]
        q, k, v = qkv[..., :H], qkv[..., H:2 * H], qkv[..., 2 * H:]
        q = q.reshape(B, T, num_heads, hd).transpose(0, 2, 1, 3)
        k = k.reshape(B, T, num_heads, hd).transpose(0, 2, 1, 3)
        v = v.reshape(B, T, num_heads, hd).transpose(0, 2, 1, 3)
        s = jnp.einsum("bhqd,bhkd->bhqk", q, k) * scale
        p = jax.nn.softmax(s, axis=-1)
        o = jnp.einsum("bhqk,bhkd->bhqd", p, v)
        o = o.transpose(0, 2, 1, 3).reshape(B, T, H)
        o = o @ params["w_ao"][l] + params["b_ao"][l]
        h = _layer_norm(h + o, params["ln1_g"][l], params["ln1_b"][l])
        ff = jnp.maximum(h @ params["w_ff1"][l] + params["b_ff1"][l], 0.0)
        ff = ff @ params["w_ff2"][l] + params["b_ff2"][l]
        h = _layer_norm(h + ff, params["ln2_g"][l], params["ln2_b"][l])
    return h


# ----------------------------- main ---------------------------------------------


if __name__ == "__main__":
    # Module hyper-parameters (defaults from TransformerEncoder.__init__)
    INPUT_DIM, HIDDEN_DIM, NUM_HEADS, NUM_LAYERS = 6, 128, 4, 2
    FF_DIM = 4 * HIDDEN_DIM
    MAX_LEN = 50          # pos_encoder length
    B, T = 2, 8

    key = jax.random.PRNGKey(0)
    keys = iter(jax.random.split(key, 32))
    L = NUM_LAYERS
    bound = 1.0 / math.sqrt(HIDDEN_DIM)

    def u(shape, b=bound):
        return jax.random.uniform(next(keys), shape, jnp.float32, -b, b)

    # Weights are stored transposed (in_features, out_features) relative to
    # PyTorch; per-layer tensors are stacked on a leading axis of size L.
    params = {
        "w_in": u((INPUT_DIM, HIDDEN_DIM), 1.0 / math.sqrt(INPUT_DIM)),
        "b_in": u((1, HIDDEN_DIM), 1.0 / math.sqrt(INPUT_DIM)),
        # pos_encoder is a learned parameter; random values exercise the add.
        "pos": 0.02 * jax.random.normal(next(keys), (MAX_LEN, HIDDEN_DIM), jnp.float32),
        "w_qkv": u((L, HIDDEN_DIM, 3 * HIDDEN_DIM)),
        "b_qkv": u((L, 1, 3 * HIDDEN_DIM)),
        "w_ao": u((L, HIDDEN_DIM, HIDDEN_DIM)),
        "b_ao": u((L, 1, HIDDEN_DIM)),
        "ln1_g": jnp.ones((L, 1, HIDDEN_DIM), jnp.float32),
        "ln1_b": jnp.zeros((L, 1, HIDDEN_DIM), jnp.float32),
        "w_ff1": u((L, HIDDEN_DIM, FF_DIM)),
        "b_ff1": u((L, 1, FF_DIM)),
        "w_ff2": u((L, FF_DIM, HIDDEN_DIM), 1.0 / math.sqrt(FF_DIM)),
        "b_ff2": u((L, 1, HIDDEN_DIM), 1.0 / math.sqrt(FF_DIM)),
        "ln2_g": jnp.ones((L, 1, HIDDEN_DIM), jnp.float32),
        "ln2_b": jnp.zeros((L, 1, HIDDEN_DIM), jnp.float32),
    }

    x = jax.random.normal(next(keys), (B, T, INPUT_DIM), jnp.float32)

    out = transformer_encoder_forward(x, params, num_heads=NUM_HEADS)
    jax.block_until_ready(out)

    ref = transformer_encoder_ref(x, params, num_heads=NUM_HEADS)
    assert out.shape == (B, T, HIDDEN_DIM)
    err = float(jnp.max(jnp.abs(out - ref)))
    # Tolerance is looser than pure-f32 because the kernel's softmax uses the
    # EUP approximate reciprocal (pl.reciprocal(..., approx=True)).
    assert jnp.allclose(out, ref, atol=1e-2, rtol=1e-2), err

    print("KERNEL_OK")
</pallas_src>

<mosaic_0001>
module attributes {stable_mosaic.version = 11 : i64} {
  func.func @_transformer_encoder_kernel(%arg0: i32, %arg1: i32, %arg2: memref<8x6xf32, #tpu.memory_space<vmem>>, %arg3: memref<8x128xf32, #tpu.memory_space<vmem>>, %arg4: memref<6x128xf32, #tpu.memory_space<vmem>>, %arg5: memref<1x128xf32, #tpu.memory_space<vmem>>, %arg6: memref<1x128x384xf32, #tpu.memory_space<vmem>>, %arg7: memref<1x1x384xf32, #tpu.memory_space<vmem>>, %arg8: memref<1x128x128xf32, #tpu.memory_space<vmem>>, %arg9: memref<1x1x128xf32, #tpu.memory_space<vmem>>, %arg10: memref<1x1x128xf32, #tpu.memory_space<vmem>>, %arg11: memref<1x1x128xf32, #tpu.memory_space<vmem>>, %arg12: memref<1x128x512xf32, #tpu.memory_space<vmem>>, %arg13: memref<1x1x512xf32, #tpu.memory_space<vmem>>, %arg14: memref<1x512x128xf32, #tpu.memory_space<vmem>>, %arg15: memref<1x1x128xf32, #tpu.memory_space<vmem>>, %arg16: memref<1x1x128xf32, #tpu.memory_space<vmem>>, %arg17: memref<1x1x128xf32, #tpu.memory_space<vmem>>, %arg18: memref<8x128xf32, #tpu.memory_space<vmem>>, %arg19: memref<8x128xf32, #tpu.memory_space<vmem>>, %arg20: memref<8x128xf32, #tpu.memory_space<vmem>>) attributes {dimension_semantics = [#tpu.dimension_semantics<parallel>, #tpu.dimension_semantics<arbitrary>], iteration_bounds = array<i64: 2, 2>, scalar_prefetch = 0 : i64, scratch_operands = 2 : i64, tpu.core_type = #tpu.core_type<tc>, window_params = [{transform_indices = @transform_0, window_bounds = array<i64: 8, 6>}, {pipeline_mode = #tpu.pipeline_mode<synchronous>, transform_indices = @transform_1, window_bounds = array<i64: 8, 128>}, {pipeline_mode = #tpu.pipeline_mode<synchronous>, transform_indices = @transform_2, window_bounds = array<i64: 6, 128>}, {pipeline_mode = #tpu.pipeline_mode<synchronous>, transform_indices = @transform_3, window_bounds = array<i64: 1, 128>}, {transform_indices = @transform_4, window_bounds = array<i64: 1, 128, 384>}, {transform_indices = @transform_5, window_bounds = array<i64: 1, 1, 384>}, {transform_indices = @transform_6, window_bounds = array<i64: 1, 128, 128>}, {transform_indices = @transform_7, window_bounds = array<i64: 1, 1, 128>}, {transform_indices = @transform_8, window_bounds = array<i64: 1, 1, 128>}, {transform_indices = @transform_9, window_bounds = array<i64: 1, 1, 128>}, {transform_indices = @transform_10, window_bounds = array<i64: 1, 128, 512>}, {transform_indices = @transform_11, window_bounds = array<i64: 1, 1, 512>}, {transform_indices = @transform_12, window_bounds = array<i64: 1, 512, 128>}, {transform_indices = @transform_13, window_bounds = array<i64: 1, 1, 128>}, {transform_indices = @transform_14, window_bounds = array<i64: 1, 1, 128>}, {transform_indices = @transform_15, window_bounds = array<i64: 1, 1, 128>}, {transform_indices = @transform_16, window_bounds = array<i64: 8, 128>}]} {
    %c0_i32 = arith.constant 0 : i32
    %0 = arith.cmpi eq, %arg1, %c0_i32 : i32
    %1 = arith.extui %0 : i1 to i32
    %c0_i32_0 = arith.constant 0 : i32
    %2 = arith.cmpi ne, %1, %c0_i32_0 : i32
    scf.if %2 {
      %c0_79 = arith.constant 0 : index
      %c0_80 = arith.constant 0 : index
      %158 = vector.load %arg2[%c0_79, %c0_80] : memref<8x6xf32, #tpu.memory_space<vmem>>, vector<8x6xf32>
      %c0_81 = arith.constant 0 : index
      %c0_82 = arith.constant 0 : index
      %159 = vector.load %arg4[%c0_81, %c0_82] : memref<6x128xf32, #tpu.memory_space<vmem>>, vector<6x128xf32>
      %cst_83 = arith.constant dense<0.000000e+00> : vector<8x128xf32>
      %160 = tpu.matmul %158, %159, %cst_83 {dimension_numbers = #tpu.dot_dimension_numbers<[1], [0], [0], [1], [0, 0, 1, 1], [], []>} : vector<8x6xf32>, vector<6x128xf32>, vector<8x128xf32> -> vector<8x128xf32>
      %c0_84 = arith.constant 0 : index
      %c0_85 = arith.constant 0 : index
      %161 = vector.load %arg5[%c0_84, %c0_85] : memref<1x128xf32, #tpu.memory_space<vmem>>, vector<1x128xf32>
      %162 = vector.broadcast %161 : vector<1x128xf32> to vector<8x128xf32>
      %163 = arith.addf %160, %162 : vector<8x128xf32>
      %c0_86 = arith.constant 0 : index
      %c0_87 = arith.constant 0 : index
      %164 = vector.load %arg3[%c0_86, %c0_87] : memref<8x128xf32, #tpu.memory_space<vmem>>, vector<8x128xf32>
      %165 = arith.addf %163, %164 : vector<8x128xf32>
      %c0_88 = arith.constant 0 : index
      %c0_89 = arith.constant 0 : index
      %166 = vector.load %arg19[%c0_88, %c0_89] : memref<8x128xf32, #tpu.memory_space<vmem>>, vector<8x128xf32>
      tpu.vector_store %arg19[%c0_88, %c0_89], %165 {strides = array<i32>} : memref<8x128xf32, #tpu.memory_space<vmem>>, vector<8x128xf32>,
    } else {
    }
    %c0 = arith.constant 0 : index
    %c0_1 = arith.constant 0 : index
    %3 = vector.load %arg19[%c0, %c0_1] : memref<8x128xf32, #tpu.memory_space<vmem>>, vector<8x128xf32>
    %c0_2 = arith.constant 0 : index
    %c0_3 = arith.constant 0 : index
    %c0_4 = arith.constant 0 : index
    %4 = vector.load %arg6[%c0_2, %c0_3, %c0_4] : memref<1x128x384xf32, #tpu.memory_space<vmem>>, vector<1x128x384xf32>
    %5 = vector.shape_cast %4 : vector<1x128x384xf32> to vector<128x384xf32>
    %cst = arith.constant dense<0.000000e+00> : vector<8x384xf32>
    %6 = tpu.matmul %3, %5, %cst {dimension_numbers = #tpu.dot_dimension_numbers<[1], [0], [0], [1], [0, 0, 1, 1], [], []>} : vector<8x128xf32>, vector<128x384xf32>, vector<8x384xf32> -> vector<8x384xf32>
    %c0_5 = arith.constant 0 : index
    %c0_6 = arith.constant 0 : index
    %c0_7 = arith.constant 0 : index
    %7 = vector.load %arg7[%c0_5, %c0_6, %c0_7] : memref<1x1x384xf32, #tpu.memory_space<vmem>>, vector<1x1x384xf32>
    %8 = vector.shape_cast %7 : vector<1x1x384xf32> to vector<1x384xf32>
    %9 = vector.broadcast %8 : vector<1x384xf32> to vector<8x384xf32>
    %10 = arith.addf %6, %9 : vector<8x384xf32>
    %11 = vector.extract_strided_slice %10 {offsets = [0, 0], sizes = [8, 128], strides = [1, 1]} : vector<8x384xf32> to vector<8x128xf32>
    %cst_8 = arith.constant 0.176776692 : f32
    %12 = vector.broadcast %cst_8 : f32 to vector<8x128xf32>
    %13 = arith.mulf %11, %12 : vector<8x128xf32>
    %14 = vector.extract_strided_slice %10 {offsets = [0, 128], sizes = [8, 128], strides = [1, 1]} : vector<8x384xf32> to vector<8x128xf32>
    %15 = vector.extract_strided_slice %10 {offsets = [0, 256], sizes = [8, 128], strides = [1, 1]} : vector<8x384xf32> to vector<8x128xf32>
    %16 = vector.extract_strided_slice %13 {offsets = [0, 0], sizes = [8, 32], strides = [1, 1]} : vector<8x128xf32> to vector<8x32xf32>
    %17 = vector.extract_strided_slice %14 {offsets = [0, 0], sizes = [8, 32], strides = [1, 1]} : vector<8x128xf32> to vector<8x32xf32>
    %18 = vector.extract_strided_slice %15 {offsets = [0, 0], sizes = [8, 32], strides = [1, 1]} : vector<8x128xf32> to vector<8x32xf32>
    %cst_9 = arith.constant dense<0.000000e+00> : vector<8x8xf32>
    %19 = tpu.matmul %16, %17, %cst_9 {dimension_numbers = #tpu.dot_dimension_numbers<[1], [1], [0], [0], [0, 0, 1, 0], [], []>} : vector<8x32xf32>, vector<8x32xf32>, vector<8x8xf32> -> vector<8x8xf32>
    %cst_10 = arith.constant dense<0xFF800000> : vector<8xf32>
    %20 = vector.multi_reduction <maximumf>, %19, %cst_10 [1] : vector<8x8xf32> to vector<8xf32>
    %21 = vector.shape_cast %20 : vector<8xf32> to vector<8x1xf32>
    %22 = vector.broadcast %21 : vector<8x1xf32> to vector<8x8xf32>
    %23 = arith.subf %19, %22 : vector<8x8xf32>
    %24 = math.exp %23 : vector<8x8xf32>
    %cst_11 = arith.constant dense<0.000000e+00> : vector<8xf32>
    %25 = vector.multi_reduction <add>, %24, %cst_11 [1] : vector<8x8xf32> to vector<8xf32>
    %26 = vector.shape_cast %25 : vector<8xf32> to vector<8x1xf32>
    %27 = tpu.reciprocal %26 {approx = true} : vector<8x1xf32> -> vector<8x1xf32>
    %28 = vector.broadcast %27 : vector<8x1xf32> to vector<8x8xf32>
    %29 = arith.mulf %24, %28 : vector<8x8xf32>
    %cst_12 = arith.constant dense<0.000000e+00> : vector<8x32xf32>
    %30 = tpu.matmul %29, %18, %cst_12 {dimension_numbers = #tpu.dot_dimension_numbers<[1], [0], [0], [1], [0, 0, 1, 1], [], []>} : vector<8x8xf32>, vector<8x32xf32>, vector<8x32xf32> -> vector<8x32xf32>
    %c0_13 = arith.constant 0 : index
    %c0_14 = arith.constant 0 : index
    %31 = vector.load %arg20[%c0_13, %c0_14] : memref<8x128xf32, #tpu.memory_space<vmem>>, vector<8x32xf32>
    tpu.vector_store %arg20[%c0_13, %c0_14], %30 {strides = array<i32>} : memref<8x128xf32, #tpu.memory_space<vmem>>, vector<8x32xf32>,
    %32 = vector.extract_strided_slice %13 {offsets = [0, 32], sizes = [8, 32], strides = [1, 1]} : vector<8x128xf32> to vector<8x32xf32>
    %33 = vector.extract_strided_slice %14 {offsets = [0, 32], sizes = [8, 32], strides = [1, 1]} : vector<8x128xf32> to vector<8x32xf32>
    %34 = vector.extract_strided_slice %15 {offsets = [0, 32], sizes = [8, 32], strides = [1, 1]} : vector<8x128xf32> to vector<8x32xf32>
    %cst_15 = arith.constant dense<0.000000e+00> : vector<8x8xf32>
    %35 = tpu.matmul %32, %33, %cst_15 {dimension_numbers = #tpu.dot_dimension_numbers<[1], [1], [0], [0], [0, 0, 1, 0], [], []>} : vector<8x32xf32>, vector<8x32xf32>, vector<8x8xf32> -> vector<8x8xf32>
    %cst_16 = arith.constant dense<0xFF800000> : vector<8xf32>
    %36 = vector.multi_reduction <maximumf>, %35, %cst_16 [1] : vector<8x8xf32> to vector<8xf32>
    %37 = vector.shape_cast %36 : vector<8xf32> to vector<8x1xf32>
    %38 = vector.broadcast %37 : vector<8x1xf32> to vector<8x8xf32>
    %39 = arith.subf %35, %38 : vector<8x8xf32>
    %40 = math.exp %39 : vector<8x8xf32>
    %cst_17 = arith.constant dense<0.000000e+00> : vector<8xf32>
    %41 = vector.multi_reduction <add>, %40, %cst_17 [1] : vector<8x8xf32> to vector<8xf32>
    %42 = vector.shape_cast %41 : vector<8xf32> to vector<8x1xf32>
    %43 = tpu.reciprocal %42 {approx = true} : vector<8x1xf32> -> vector<8x1xf32>
    %44 = vector.broadcast %43 : vector<8x1xf32> to vector<8x8xf32>
    %45 = arith.mulf %40, %44 : vector<8x8xf32>
    %cst_18 = arith.constant dense<0.000000e+00> : vector<8x32xf32>
    %46 = tpu.matmul %45, %34, %cst_18 {dimension_numbers = #tpu.dot_dimension_numbers<[1], [0], [0], [1], [0, 0, 1, 1], [], []>} : vector<8x8xf32>, vector<8x32xf32>, vector<8x32xf32> -> vector<8x32xf32>
    %c0_19 = arith.constant 0 : index
    %c32 = arith.constant 32 : index
    %47 = vector.load %arg20[%c0_19, %c32] : memref<8x128xf32, #tpu.memory_space<vmem>>, vector<8x32xf32>
    tpu.vector_store %arg20[%c0_19, %c32], %46 {strides = array<i32>} : memref<8x128xf32, #tpu.memory_space<vmem>>, vector<8x32xf32>,
    %48 = vector.extract_strided_slice %13 {offsets = [0, 64], sizes = [8, 32], strides = [1, 1]} : vector<8x128xf32> to vector<8x32xf32>
    %49 = vector.extract_strided_slice %14 {offsets = [0, 64], sizes = [8, 32], strides = [1, 1]} : vector<8x128xf32> to vector<8x32xf32>
    %50 = vector.extract_strided_slice %15 {offsets = [0, 64], sizes = [8, 32], strides = [1, 1]} : vector<8x128xf32> to vector<8x32xf32>
    %cst_20 = arith.constant dense<0.000000e+00> : vector<8x8xf32>
    %51 = tpu.matmul %48, %49, %cst_20 {dimension_numbers = #tpu.dot_dimension_numbers<[1], [1], [0], [0], [0, 0, 1, 0], [], []>} : vector<8x32xf32>, vector<8x32xf32>, vector<8x8xf32> -> vector<8x8xf32>
    %cst_21 = arith.constant dense<0xFF800000> : vector<8xf32>
    %52 = vector.multi_reduction <maximumf>, %51, %cst_21 [1] : vector<8x8xf32> to vector<8xf32>
    %53 = vector.shape_cast %52 : vector<8xf32> to vector<8x1xf32>
    %54 = vector.broadcast %53 : vector<8x1xf32> to vector<8x8xf32>
    %55 = arith.subf %51, %54 : vector<8x8xf32>
    %56 = math.exp %55 : vector<8x8xf32>
    %cst_22 = arith.constant dense<0.000000e+00> : vector<8xf32>
    %57 = vector.multi_reduction <add>, %56, %cst_22 [1] : vector<8x8xf32> to vector<8xf32>
    %58 = vector.shape_cast %57 : vector<8xf32> to vector<8x1xf32>
    %59 = tpu.reciprocal %58 {approx = true} : vector<8x1xf32> -> vector<8x1xf32>
    %60 = vector.broadcast %59 : vector<8x1xf32> to vector<8x8xf32>
    %61 = arith.mulf %56, %60 : vector<8x8xf32>
    %cst_23 = arith.constant dense<0.000000e+00> : vector<8x32xf32>
    %62 = tpu.matmul %61, %50, %cst_23 {dimension_numbers = #tpu.dot_dimension_numbers<[1], [0], [0], [1], [0, 0, 1, 1], [], []>} : vector<8x8xf32>, vector<8x32xf32>, vector<8x32xf32> -> vector<8x32xf32>
    %c0_24 = arith.constant 0 : index
    %c64 = arith.constant 64 : index
    %63 = vector.load %arg20[%c0_24, %c64] : memref<8x128xf32, #tpu.memory_space<vmem>>, vector<8x32xf32>
    tpu.vector_store %arg20[%c0_24, %c64], %62 {strides = array<i32>} : memref<8x128xf32, #tpu.memory_space<vmem>>, vector<8x32xf32>,
    %64 = vector.extract_strided_slice %13 {offsets = [0, 96], sizes = [8, 32], strides = [1, 1]} : vector<8x128xf32> to vector<8x32xf32>
    %65 = vector.extract_strided_slice %14 {offsets = [0, 96], sizes = [8, 32], strides = [1, 1]} : vector<8x128xf32> to vector<8x32xf32>
    %66 = vector.extract_strided_slice %15 {offsets = [0, 96], sizes = [8, 32], strides = [1, 1]} : vector<8x128xf32> to vector<8x32xf32>
    %cst_25 = arith.constant dense<0.000000e+00> : vector<8x8xf32>
    %67 = tpu.matmul %64, %65, %cst_25 {dimension_numbers = #tpu.dot_dimension_numbers<[1], [1], [0], [0], [0, 0, 1, 0], [], []>} : vector<8x32xf32>, vector<8x32xf32>, vector<8x8xf32> -> vector<8x8xf32>
    %cst_26 = arith.constant dense<0xFF800000> : vector<8xf32>
    %68 = vector.multi_reduction <maximumf>, %67, %cst_26 [1] : vector<8x8xf32> to vector<8xf32>
    %69 = vector.shape_cast %68 : vector<8xf32> to vector<8x1xf32>
    %70 = vector.broadcast %69 : vector<8x1xf32> to vector<8x8xf32>
    %71 = arith.subf %67, %70 : vector<8x8xf32>
    %72 = math.exp %71 : vector<8x8xf32>
    %cst_27 = arith.constant dense<0.000000e+00> : vector<8xf32>
    %73 = vector.multi_reduction <add>, %72, %cst_27 [1] : vector<8x8xf32> to vector<8xf32>
    %74 = vector.shape_cast %73 : vector<8xf32> to vector<8x1xf32>
    %75 = tpu.reciprocal %74 {approx = true} : vector<8x1xf32> -> vector<8x1xf32>
    %76 = vector.broadcast %75 : vector<8x1xf32> to vector<8x8xf32>
    %77 = arith.mulf %72, %76 : vector<8x8xf32>
    %cst_28 = arith.constant dense<0.000000e+00> : vector<8x32xf32>
    %78 = tpu.matmul %77, %66, %cst_28 {dimension_numbers = #tpu.dot_dimension_numbers<[1], [0], [0], [1], [0, 0, 1, 1], [], []>} : vector<8x8xf32>, vector<8x32xf32>, vector<8x32xf32> -> vector<8x32xf32>
    %c0_29 = arith.constant 0 : index
    %c96 = arith.constant 96 : index
    %79 = vector.load %arg20[%c0_29, %c96] : memref<8x128xf32, #tpu.memory_space<vmem>>, vector<8x32xf32>
    tpu.vector_store %arg20[%c0_29, %c96], %78 {strides = array<i32>} : memref<8x128xf32, #tpu.memory_space<vmem>>, vector<8x32xf32>,
    %c0_30 = arith.constant 0 : index
    %c0_31 = arith.constant 0 : index
    %80 = vector.load %arg20[%c0_30, %c0_31] : memref<8x128xf32, #tpu.memory_space<vmem>>, vector<8x128xf32>
    %c0_32 = arith.constant 0 : index
    %c0_33 = arith.constant 0 : index
    %c0_34 = arith.constant 0 : index
    %81 = vector.load %arg8[%c0_32, %c0_33, %c0_34] : memref<1x128x128xf32, #tpu.memory_space<vmem>>, vector<1x128x128xf32>
    %82 = vector.shape_cast %81 : vector<1x128x128xf32> to vector<128x128xf32>
    %cst_35 = arith.constant dense<0.000000e+00> : vector<8x128xf32>
    %83 = tpu.matmul %80, %82, %cst_35 {dimension_numbers = #tpu.dot_dimension_numbers<[1], [0], [0], [1], [0, 0, 1, 1], [], []>} : vector<8x128xf32>, vector<128x128xf32>, vector<8x128xf32> -> vector<8x128xf32>
    %c0_36 = arith.constant 0 : index
    %c0_37 = arith.constant 0 : index
    %c0_38 = arith.constant 0 : index
    %84 = vector.load %arg9[%c0_36, %c0_37, %c0_38] : memref<1x1x128xf32, #tpu.memory_space<vmem>>, vector<1x1x128xf32>
    %85 = vector.shape_cast %84 : vector<1x1x128xf32> to vector<1x128xf32>
    %86 = vector.broadcast %85 : vector<1x128xf32> to vector<8x128xf32>
    %87 = arith.addf %83, %86 : vector<8x128xf32>
    %88 = arith.addf %3, %87 : vector<8x128xf32>
    %c0_39 = arith.constant 0 : index
    %c0_40 = arith.constant 0 : index
    %c0_41 = arith.constant 0 : index
    %89 = vector.load %arg10[%c0_39, %c0_40, %c0_41] : memref<1x1x128xf32, #tpu.memory_space<vmem>>, vector<1x1x128xf32>
    %90 = vector.shape_cast %89 : vector<1x1x128xf32> to vector<1x128xf32>
    %c0_42 = arith.constant 0 : index
    %c0_43 = arith.constant 0 : index
    %c0_44 = arith.constant 0 : index
    %91 = vector.load %arg11[%c0_42, %c0_43, %c0_44] : memref<1x1x128xf32, #tpu.memory_space<vmem>>, vector<1x1x128xf32>
    %92 = vector.shape_cast %91 : vector<1x1x128xf32> to vector<1x128xf32>
    %cst_45 = arith.constant dense<0.000000e+00> : vector<8xf32>
    %93 = vector.multi_reduction <add>, %88, %cst_45 [1] : vector<8x128xf32> to vector<8xf32>
    %94 = vector.shape_cast %93 : vector<8xf32> to vector<8x1xf32>
    %cst_46 = arith.constant 1.280000e+02 : f32
    %95 = vector.broadcast %cst_46 : f32 to vector<8x1xf32>
    %96 = arith.divf %94, %95 : vector<8x1xf32>
    %97 = vector.broadcast %96 : vector<8x1xf32> to vector<8x128xf32>
    %98 = arith.subf %88, %97 : vector<8x128xf32>
    %99 = arith.mulf %98, %98 : vector<8x128xf32>
    %cst_47 = arith.constant dense<0.000000e+00> : vector<8xf32>
    %100 = vector.multi_reduction <add>, %99, %cst_47 [1] : vector<8x128xf32> to vector<8xf32>
    %101 = vector.shape_cast %100 : vector<8xf32> to vector<8x1xf32>
    %cst_48 = arith.constant 1.280000e+02 : f32
    %102 = vector.broadcast %cst_48 : f32 to vector<8x1xf32>
    %103 = arith.divf %101, %102 : vector<8x1xf32>
    %cst_49 = arith.constant 9.99999974E-6 : f32
    %104 = vector.broadcast %cst_49 : f32 to vector<8x1xf32>
    %105 = arith.addf %103, %104 : vector<8x1xf32>
    %106 = math.rsqrt %105 : vector<8x1xf32>
    %107 = vector.broadcast %106 : vector<8x1xf32> to vector<8x128xf32>
    %108 = arith.mulf %98, %107 : vector<8x128xf32>
    %109 = vector.broadcast %90 : vector<1x128xf32> to vector<8x128xf32>
    %110 = arith.mulf %108, %109 : vector<8x128xf32>
    %111 = vector.broadcast %92 : vector<1x128xf32> to vector<8x128xf32>
    %112 = arith.addf %110, %111 : vector<8x128xf32>
    %c0_50 = arith.constant 0 : index
    %c0_51 = arith.constant 0 : index
    %c0_52 = arith.constant 0 : index
    %113 = vector.load %arg12[%c0_50, %c0_51, %c0_52] : memref<1x128x512xf32, #tpu.memory_space<vmem>>, vector<1x128x512xf32>
    %114 = vector.shape_cast %113 : vector<1x128x512xf32> to vector<128x512xf32>
    %cst_53 = arith.constant dense<0.000000e+00> : vector<8x512xf32>
    %115 = tpu.matmul %112, %114, %cst_53 {dimension_numbers = #tpu.dot_dimension_numbers<[1], [0], [0], [1], [0, 0, 1, 1], [], []>} : vector<8x128xf32>, vector<128x512xf32>, vector<8x512xf32> -> vector<8x512xf32>
    %c0_54 = arith.constant 0 : index
    %c0_55 = arith.constant 0 : index
    %c0_56 = arith.constant 0 : index
    %116 = vector.load %arg13[%c0_54, %c0_55, %c0_56] : memref<1x1x512xf32, #tpu.memory_space<vmem>>, vector<1x1x512xf32>
    %117 = vector.shape_cast %116 : vector<1x1x512xf32> to vector<1x512xf32>
    %118 = vector.broadcast %117 : vector<1x512xf32> to vector<8x512xf32>
    %119 = arith.addf %115, %118 : vector<8x512xf32>
    %cst_57 = arith.constant 0.000000e+00 : f32
    %120 = vector.broadcast %cst_57 : f32 to vector<8x512xf32>
    %121 = arith.maximumf %119, %120 : vector<8x512xf32>
    %c0_58 = arith.constant 0 : index
    %c0_59 = arith.constant 0 : index
    %c0_60 = arith.constant 0 : index
    %122 = vector.load %arg14[%c0_58, %c0_59, %c0_60] : memref<1x512x128xf32, #tpu.memory_space<vmem>>, vector<1x512x128xf32>
    %123 = vector.shape_cast %122 : vector<1x512x128xf32> to vector<512x128xf32>
    %cst_61 = arith.constant dense<0.000000e+00> : vector<8x128xf32>
    %124 = tpu.matmul %121, %123, %cst_61 {dimension_numbers = #tpu.dot_dimension_numbers<[1], [0], [0], [1], [0, 0, 1, 1], [], []>} : vector<8x512xf32>, vector<512x128xf32>, vector<8x128xf32> -> vector<8x128xf32>
    %c0_62 = arith.constant 0 : index
    %c0_63 = arith.constant 0 : index
    %c0_64 = arith.constant 0 : index
    %125 = vector.load %arg15[%c0_62, %c0_63, %c0_64] : memref<1x1x128xf32, #tpu.memory_space<vmem>>, vector<1x1x128xf32>
    %126 = vector.shape_cast %125 : vector<1x1x128xf32> to vector<1x128xf32>
    %127 = vector.broadcast %126 : vector<1x128xf32> to vector<8x128xf32>
    %128 = arith.addf %124, %127 : vector<8x128xf32>
    %129 = arith.addf %112, %128 : vector<8x128xf32>
    %c0_65 = arith.constant 0 : index
    %c0_66 = arith.constant 0 : index
    %c0_67 = arith.constant 0 : index
    %130 = vector.load %arg16[%c0_65, %c0_66, %c0_67] : memref<1x1x128xf32, #tpu.memory_space<vmem>>, vector<1x1x128xf32>
    %131 = vector.shape_cast %130 : vector<1x1x128xf32> to vector<1x128xf32>
    %c0_68 = arith.constant 0 : index
    %c0_69 = arith.constant 0 : index
    %c0_70 = arith.constant 0 : index
    %132 = vector.load %arg17[%c0_68, %c0_69, %c0_70] : memref<1x1x128xf32, #tpu.memory_space<vmem>>, vector<1x1x128xf32>
    %133 = vector.shape_cast %132 : vector<1x1x128xf32> to vector<1x128xf32>
    %cst_71 = arith.constant dense<0.000000e+00> : vector<8xf32>
    %134 = vector.multi_reduction <add>, %129, %cst_71 [1] : vector<8x128xf32> to vector<8xf32>
    %135 = vector.shape_cast %134 : vector<8xf32> to vector<8x1xf32>
    %cst_72 = arith.constant 1.280000e+02 : f32
    %136 = vector.broadcast %cst_72 : f32 to vector<8x1xf32>
    %137 = arith.divf %135, %136 : vector<8x1xf32>
    %138 = vector.broadcast %137 : vector<8x1xf32> to vector<8x128xf32>
    %139 = arith.subf %129, %138 : vector<8x128xf32>
    %140 = arith.mulf %139, %139 : vector<8x128xf32>
    %cst_73 = arith.constant dense<0.000000e+00> : vector<8xf32>
    %141 = vector.multi_reduction <add>, %140, %cst_73 [1] : vector<8x128xf32> to vector<8xf32>
    %142 = vector.shape_cast %141 : vector<8xf32> to vector<8x1xf32>
    %cst_74 = arith.constant 1.280000e+02 : f32
    %143 = vector.broadcast %cst_74 : f32 to vector<8x1xf32>
    %144 = arith.divf %142, %143 : vector<8x1xf32>
    %cst_75 = arith.constant 9.99999974E-6 : f32
    %145 = vector.broadcast %cst_75 : f32 to vector<8x1xf32>
    %146 = arith.addf %144, %145 : vector<8x1xf32>
    %147 = math.rsqrt %146 : vector<8x1xf32>
    %148 = vector.broadcast %147 : vector<8x1xf32> to vector<8x128xf32>
    %149 = arith.mulf %139, %148 : vector<8x128xf32>
    %150 = vector.broadcast %131 : vector<1x128xf32> to vector<8x128xf32>
    %151 = arith.mulf %149, %150 : vector<8x128xf32>
    %152 = vector.broadcast %133 : vector<1x128xf32> to vector<8x128xf32>
    %153 = arith.addf %151, %152 : vector<8x128xf32>
    %c0_76 = arith.constant 0 : index
    %c0_77 = arith.constant 0 : index
    %154 = vector.load %arg19[%c0_76, %c0_77] : memref<8x128xf32, #tpu.memory_space<vmem>>, vector<8x128xf32>
    tpu.vector_store %arg19[%c0_76, %c0_77], %153 {strides = array<i32>} : memref<8x128xf32, #tpu.memory_space<vmem>>, vector<8x128xf32>,
    %c1_i32 = arith.constant 1 : i32
    %155 = arith.cmpi eq, %arg1, %c1_i32 : i32
    %156 = arith.extui %155 : i1 to i32
    %c0_i32_78 = arith.constant 0 : i32
    %157 = arith.cmpi ne, %156, %c0_i32_78 : i32
    scf.if %157 {
      %c0_79 = arith.constant 0 : index
      %c0_80 = arith.constant 0 : index
      %158 = vector.load %arg18[%c0_79, %c0_80] : memref<8x128xf32, #tpu.memory_space<vmem>>, vector<8x128xf32>
      tpu.vector_store %arg18[%c0_79, %c0_80], %153 {strides = array<i32>} : memref<8x128xf32, #tpu.memory_space<vmem>>, vector<8x128xf32>,
    } else {
    }
    return
  }
  func.func @transform_0(%arg0: i32, %arg1: i32) -> (i32, i32) {
    %c0_i32 = arith.constant 0 : i32
    %c0_i32_0 = arith.constant 0 : i32
    return %arg0, %c0_i32 : i32, i32
  }
  func.func @transform_1(%arg0: i32, %arg1: i32) -> (i32, i32) {
    %c0_i32 = arith.constant 0 : i32
    %c0_i32_0 = arith.constant 0 : i32
    %c0_i32_1 = arith.constant 0 : i32
    return %c0_i32, %c0_i32_0 : i32, i32
  }
  func.func @transform_2(%arg0: i32, %arg1: i32) -> (i32, i32) {
    %c0_i32 = arith.constant 0 : i32
    %c0_i32_0 = arith.constant 0 : i32
    %c0_i32_1 = arith.constant 0 : i32
    return %c0_i32, %c0_i32_0 : i32, i32
  }
  func.func @transform_3(%arg0: i32, %arg1: i32) -> (i32, i32) {
    %c0_i32 = arith.constant 0 : i32
    %c0_i32_0 = arith.constant 0 : i32
    %c0_i32_1 = arith.constant 0 : i32
    return %c0_i32, %c0_i32_0 : i32, i32
  }
  func.func @transform_4(%arg0: i32, %arg1: i32) -> (i32, i32, i32) {
    %c0_i32 = arith.constant 0 : i32
    %c0_i32_0 = arith.constant 0 : i32
    %c0_i32_1 = arith.constant 0 : i32
    return %arg1, %c0_i32, %c0_i32_0 : i32, i32, i32
  }
  func.func @transform_5(%arg0: i32, %arg1: i32) -> (i32, i32, i32) {
    %c0_i32 = arith.constant 0 : i32
    %c0_i32_0 = arith.constant 0 : i32
    %c0_i32_1 = arith.constant 0 : i32
    return %arg1, %c0_i32, %c0_i32_0 : i32, i32, i32
  }
  func.func @transform_6(%arg0: i32, %arg1: i32) -> (i32, i32, i32) {
    %c0_i32 = arith.constant 0 : i32
    %c0_i32_0 = arith.constant 0 : i32
    %c0_i32_1 = arith.constant 0 : i32
    return %arg1, %c0_i32, %c0_i32_0 : i32, i32, i32
  }
  func.func @transform_7(%arg0: i32, %arg1: i32) -> (i32, i32, i32) {
    %c0_i32 = arith.constant 0 : i32
    %c0_i32_0 = arith.constant 0 : i32
    %c0_i32_1 = arith.constant 0 : i32
    return %arg1, %c0_i32, %c0_i32_0 : i32, i32, i32
  }
  func.func @transform_8(%arg0: i32, %arg1: i32) -> (i32, i32, i32) {
    %c0_i32 = arith.constant 0 : i32
    %c0_i32_0 = arith.constant 0 : i32
    %c0_i32_1 = arith.constant 0 : i32
    return %arg1, %c0_i32, %c0_i32_0 : i32, i32, i32
  }
  func.func @transform_9(%arg0: i32, %arg1: i32) -> (i32, i32, i32) {
    %c0_i32 = arith.constant 0 : i32
    %c0_i32_0 = arith.constant 0 : i32
    %c0_i32_1 = arith.constant 0 : i32
    return %arg1, %c0_i32, %c0_i32_0 : i32, i32, i32
  }
  func.func @transform_10(%arg0: i32, %arg1: i32) -> (i32, i32, i32) {
    %c0_i32 = arith.constant 0 : i32
    %c0_i32_0 = arith.constant 0 : i32
    %c0_i32_1 = arith.constant 0 : i32
    return %arg1, %c0_i32, %c0_i32_0 : i32, i32, i32
  }
  func.func @transform_11(%arg0: i32, %arg1: i32) -> (i32, i32, i32) {
    %c0_i32 = arith.constant 0 : i32
    %c0_i32_0 = arith.constant 0 : i32
    %c0_i32_1 = arith.constant 0 : i32
    return %arg1, %c0_i32, %c0_i32_0 : i32, i32, i32
  }
  func.func @transform_12(%arg0: i32, %arg1: i32) -> (i32, i32, i32) {
    %c0_i32 = arith.constant 0 : i32
    %c0_i32_0 = arith.constant 0 : i32
    %c0_i32_1 = arith.constant 0 : i32
    return %arg1, %c0_i32, %c0_i32_0 : i32, i32, i32
  }
  func.func @transform_13(%arg0: i32, %arg1: i32) -> (i32, i32, i32) {
    %c0_i32 = arith.constant 0 : i32
    %c0_i32_0 = arith.constant 0 : i32
    %c0_i32_1 = arith.constant 0 : i32
    return %arg1, %c0_i32, %c0_i32_0 : i32, i32, i32
  }
  func.func @transform_14(%arg0: i32, %arg1: i32) -> (i32, i32, i32) {
    %c0_i32 = arith.constant 0 : i32
    %c0_i32_0 = arith.constant 0 : i32
    %c0_i32_1 = arith.constant 0 : i32
    return %arg1, %c0_i32, %c0_i32_0 : i32, i32, i32
  }
  func.func @transform_15(%arg0: i32, %arg1: i32) -> (i32, i32, i32) {
    %c0_i32 = arith.constant 0 : i32
    %c0_i32_0 = arith.constant 0 : i32
    %c0_i32_1 = arith.constant 0 : i32
    return %arg1, %c0_i32, %c0_i32_0 : i32, i32, i32
  }
  func.func @transform_16(%arg0: i32, %arg1: i32) -> (i32, i32) {
    %c0_i32 = arith.constant 0 : i32
    %c0_i32_0 = arith.constant 0 : i32
    return %arg0, %c0_i32 : i32, i32
  }
}

</mosaic_0001>

<bundles_post_ra>
// kernel: tpu_custom_call.1
= control target key start
LH: loop header
LB: loop body
LE: loop exit
PB: predicated region body
PF: predicated region fallthrough
CT: control target
= control target key end

     0   :  { %s4203_s0 = inlined_call_operand.vmem [shape: f32[16,6], index: 0, kind: input, shape index: {}]   ;;  %s4204_s1 = inlined_call_operand.vmem [shape: f32[8,128], index: 1, kind: input, shape index: {}]   ;;  %s4205_s2 = inlined_call_operand.vmem [shape: f32[6,128], index: 2, kind: input, shape index: {}]   ;;  %s4206_s3 = inlined_call_operand.hbm [shape: f32[1,128], index: 3, kind: input, shape index: {}]   ;;  %s4207_s4 = inlined_call_operand.hbm [shape: f32[2,128,384], index: 4, kind: input, shape index: {}]   ;;  %s4208_s5 = inlined_call_operand.vmem [shape: f32[2,1,384], index: 5, kind: input, shape index: {}]   ;;  %s4209_s6 = inlined_call_operand.hbm [shape: f32[2,128,128], index: 6, kind: input, shape index: {}]   ;;  %s4210_s7 = inlined_call_operand.vmem [shape: f32[2,1,128], index: 7, kind: input, shape index: {}]   ;;  %s4211_s8 = inlined_call_operand.vmem [shape: f32[2,1,128], index: 8, kind: input, shape index: {}]   ;;  %s4212_s9 = inlined_call_operand.vmem [shape: f32[2,1,128], index: 9, kind: input, shape index: {}]   ;;  %s4213_s10 = inlined_call_operand.hbm [shape: f32[2,128,512], index: 10, kind: input, shape index: {}]   ;;  %s4214_s11 = inlined_call_operand.vmem [shape: f32[2,1,512], index: 11, kind: input, shape index: {}]   ;;  %s4215_s12 = inlined_call_operand.hbm [shape: f32[2,512,128], index: 12, kind: input, shape index: {}]   ;;  %s4216_s13 = inlined_call_operand.vmem [shape: f32[2,1,128], index: 13, kind: input, shape index: {}]   ;;  %s4217_s14 = inlined_call_operand.vmem [shape: f32[2,1,128], index: 14, kind: input, shape index: {}]   ;;  %s4218_s15 = inlined_call_operand.vmem [shape: f32[2,1,128], index: 15, kind: input, shape index: {}]   ;;  %s4219_s16 = inlined_call_operand.hbm [shape: f32[16,128], index: 16, kind: output, shape index: {}]  }
   0x1   :  { %4239 = sst [smem:[#allocation33_spill]] %s4203_s0 }
   0x2   :  { %4240 = sst [smem:[#allocation34_spill]] %s4204_s1 }
   0x3   :  { %4241 = sst [smem:[#allocation35_spill]] %s4205_s2 }
   0x4   :  { %4242 = sst [smem:[#allocation36_spill]] %s4206_s3 }
   0x5   :  { %4243 = sst [smem:[#allocation37_spill]] %s4207_s4 }
   0x6   :  { %4244 = sst [smem:[#allocation38_spill]] %s4208_s5 }
   0x7   :  { %4245 = sst [smem:[#allocation39_spill]] %s4209_s6 }
   0x8   :  { %4246 = sst [smem:[#allocation40_spill]] %s4210_s7 }
   0x9   :  { %4247 = sst [smem:[#allocation41_spill]] %s4211_s8 }
   0xa   :  { %4248 = sst [smem:[#allocation42_spill]] %s4212_s9 }
   0xb   :  { %4249 = sst [smem:[#allocation43_spill]] %s4213_s10 }
   0xc   :  { %4250 = sst [smem:[#allocation44_spill]] %s4214_s11 }
   0xd   :  { %4251 = sst [smem:[#allocation45_spill]] %s4215_s12 }
   0xe   :  { %4252 = sst [smem:[#allocation46_spill]] %s4216_s13 }
   0xf   :  { %4253 = sst [smem:[#allocation47_spill]] %s4217_s14 }
  0x10   :  { %4254 = sst [smem:[#allocation48_spill]] %s4218_s15 }
  0x11   :  { %4255 = sst [smem:[#allocation49_spill]] %s4219_s16 }
  0x12   :  { %21 = vsyncpa [#allocation5], 0 }
  0x13   :  { %22 = vsyncpa [#allocation8], 0 }
  0x14   :  { %24 = vsyncpa [#allocation8 + $0x1], 0 }
  0x15   :  { %25 = vsyncpa [#allocation11], 0 }
  0x16   :  { %27 = vsyncpa [#allocation11 + $0x1], 0 }
  0x17   :  { %28 = vsyncpa [#allocation6], 0 }
  0x18   :  { %30 = vsyncpa [#allocation6 + $0x1], 0  ;;  %s3480_s21 = smov 0   ;;  %s3482_s22 = smov 0  }
  0x19   :  { %s3484_s23 = smov 0   ;;  %s3486_s24 = smov 0  }
  0x1a   :  { %s3488_s25 = smov 0   ;;  %s3490_s26 = smov 0  }
  0x1b   :  { %s3492_s27 = smov 0   ;;  %s3494_s28 = smov 0  }
  0x1c   :  { %s3496_s29 = smov 0   ;;  %s3498_s30 = smov 0  }
  0x1d   :  { %s3500_s0 = smov 0  }
  0x1e LB: > { %4256 = sst [smem:[#allocation18_spill]] %s3334_s21  ;;  %s45_s17 = sadd.s32 1, %s3366_s29  ;;  %s3374_s0 = sphi %s3500_s0, %s36_s0   ;;  %s3370_s30 = sphi %s3498_s30, %s4327_s30   ;;  %s3366_s29 = sphi %s3496_s29, %s4326_s29   ;;  %s3362_s28 = sphi %s3494_s28, %s4325_s28   ;;  %s3358_s27 = sphi %s3492_s27, %s4324_s27   ;;  %s3354_s26 = sphi %s3490_s26, %s4323_s26   ;;  %s3350_s25 = sphi %s3488_s25, %s4322_s25   ;;  %s3346_s24 = sphi %s3486_s24, %s4321_s24   ;;  %s3342_s23 = sphi %s3484_s23, %s4320_s23   ;;  %s3338_s22 = sphi %s3482_s22, %s4329_s22   ;;  %s3334_s21 = sphi %s3480_s21, %s4328_s21  }
  0x1f   : > { %4257 = sst [smem:[#allocation19_spill]] %s3342_s23  ;;  %s144_s18 = sadd.s32 1, %s3354_s26 }
  0x20   : > { %4258 = sst [smem:[#allocation20_spill]] %s3350_s25  ;;  %p3537_p0 = scmp.ge.s32.totalorder %s45_s17, 2 }
  0x21   : > { %4259 = sst [smem:[#allocation21_spill]] %s3354_s26  ;;  %p151_p1 = scmp.ne.s32.totalorder %s3354_s26, %s3350_s25 }
  0x22   : > { %4260 = sst [smem:[#allocation22_spill]] %s3358_s27  ;;  %p152_p2 = scmp.eq.s32.totalorder %s3374_s0, 0 }
  0x23   : > { %4261 = sst [smem:[#allocation23_spill]] %s3362_s28  ;;  %s4331_s17 = smov (%p3537_p0, %s45_s17), 0 }
  0x24   : > { %4262 = sst [smem:[#allocation24_spill]] %s3366_s29  ;;  %p153_p3 = por %p152_p2, %p151_p1 }
  0x25   : > { %4263 = sst [smem:[#allocation25_spill]] %s3370_s30  ;;  %p2983_p4 = scmp.lt.s32.totalorder %s3374_s0, 4 }
  0x26   : > { %4264 = sst [smem:[#allocation26_spill]] %s3374_s0  ;;  %s141_s20 = ssub.s32 %s3366_s29, %s4331_s17 }
  0x27   : > { %4266 = sst [smem:[#allocation27_spill]] %s4331_s17  ;;  %p142_p5 = scmp.eq.s32.totalorder %s141_s20, 0 }
  0x28   : > { %s3553_s1 = sand.u32 1, %s3354_s26   ;;  %s2944_s2 = smul.u32 6144, %s3366_s29 }
  0x29   : > { %s3557_s15 = scalar_select %p142_p5, %s3354_s26, %s144_s18  }
  0x2a   : > { %s2943_s14 = smul.u32 384, %s3553_s1  ;;  %s4268_s4 = sld [smem:[#allocation37_spill]] }
  0x2b   : > { %4267 = sst [smem:[#allocation28_spill]] %s3557_s15  ;;  %p3563_p6 = pnand %p2983_p4, %p153_p3 }
  0x2c   : > { %s521_s17 = scalar_lea.vmem [#allocation7], %s2943_s14  ;;  %s4270_s20 = sand.u32 1, %s3374_s0  }
  0x2d   : > { %s528_s16 = sshll.u32 %s521_s17, 4  ;;  %s3569_s8 = scalar_lea.sflag [#allocation8], %s4270_s20  ;;  %s529_s16 = int_to_ptr.vmem [resolvable:$true] %s528_s16 }
  0x2e   : > { %p4227_p7 = pneg %p3563_p6  ;;  %s3121_s18 = scalar_lea.vmem %s529_s16, 6144 }
  0x2f   : > { %p3122_p8 = scmp.ne.s32.totalorder %s529_s16, %s3121_s18 }
  0x30   : > { %s527_s9 = scalar_lea.hbm %s4268_s4, %s2944_s2  ;;  %s3376_s2 = smov [#allocation7]  }
  0x31   : > { %p3124_p9 = pnand %p3122_p8, %p4227_p7  ;;  %s3126_s11 = sshll.u32 %s3376_s2, 4  ;;  %s3127_s11 = int_to_ptr.vmem [resolvable:$false] %s3126_s11 }
  0x32   : > { %s3128_s13 = scalar_lea.vmem %s3127_s11, 12288  ;;  %p3129_p11 = scmp.lt.s32.totalorder %s529_s16, %s3127_s11 }
  0x33   : > { %p3125_p10 = pneg %p3124_p9  ;;  %p3130_p12 = scmp.lt.s32.totalorder %s3128_s13, %s3121_s18 }
  0x35   : > { %p3131_p13 = por %p3130_p12, %p3129_p11 }
  0x37   : > { %p3132_p1 = pnand %p3131_p13, %p3125_p10 }
  0x39   : > { %3135 = shalt.err (!%p3132_p1)
}
  0x3a   : > { %s3377_s14 = smov 384   ;;  %s3378_s17 = smov 24  }
  0x3b   : > { %2968 = dma.hbm_to_vmem [thread:$0]  (!%p3563_p6), %s527_s9, 6144, %s529_s16, %s3569_s8, %s3377_s14, %s3377_s14, %s3378_s17  }
  0x3c   : > { %s2662_s20 = sshll.u32 %s3553_s1, 9  ;;  %s2704_s4 = sshll.u32 %s3366_s29, 13 }
  0x3d   : > { %s4271_s10 = sld [smem:[#allocation43_spill]]  ;;  %s588_s18 = scalar_lea.vmem [#allocation10], %s2662_s20 }
  0x3e   : > { %s595_s13 = sshll.u32 %s588_s18, 4  ;;  %s4272_s26 = sand.u32 1, %s3374_s0   ;;  %s596_s13 = int_to_ptr.vmem [resolvable:$true] %s595_s13 }
  0x3f   : > { %s3586_s7 = scalar_lea.sflag [#allocation11], %s4272_s26  ;;  %s3149_s27 = scalar_lea.vmem %s596_s13, 8192 }
  0x40   : > { %p3150_p2 = scmp.ne.s32.totalorder %s596_s13, %s3149_s27  ;;  %s3379_s28 = smov [#allocation10]  }
  0x41   : > { %s3154_s9 = sshll.u32 %s3379_s28, 4  ;;  %s3155_s9 = int_to_ptr.vmem [resolvable:$false] %s3154_s9 }
  0x42   : > { %p3152_p3 = pnand %p3150_p2, %p4227_p7  ;;  %s3156_s16 = scalar_lea.vmem %s3155_s9, 16384 }
  0x43   : > { %s594_s11 = scalar_lea.hbm %s4271_s10, %s2704_s4  ;;  %p3157_p5 = scmp.lt.s32.totalorder %s596_s13, %s3155_s9 }
  0x44   : > { %p3153_p4 = pneg %p3152_p3  ;;  %p3158_p8 = scmp.lt.s32.totalorder %s3156_s16, %s3149_s27 }
  0x46   : > { %p3159_p9 = por %p3158_p8, %p3157_p5 }
  0x48   : > { %p3160_p10 = pnand %p3159_p9, %p3153_p4 }
  0x4a   : > { %3163 = shalt.err (!%p3160_p10)
}
  0x4b   : > { %s3380_s15 = smov 512   ;;  %s3381_s26 = smov 32  }
  0x4c   : > { %2974 = dma.hbm_to_vmem [thread:$0]  (!%p3563_p6), %s594_s11, 8192, %s596_s13, %s3586_s7, %s3380_s15, %s3380_s15, %s3381_s26  }
  0x4d   : > { %s4273_s12 = sld [smem:[#allocation45_spill]]  ;;  %s616_s17 = scalar_lea.vmem [#allocation12], %s2662_s20 }
  0x4e   : > { %s623_s2 = sshll.u32 %s616_s17, 4  ;;  %s3602_s18 = sadd.s32 4294967295, %s3374_s0   ;;  %s3599_s2 = int_to_ptr.vmem [resolvable:$true] %s623_s2 }
  0x4f   : > { %s2654_s9 = sadd.s32 4294967294, %s3374_s0   ;;  %s48_s11 = sadd.s32 1, %s3370_s30 }
  0x50   : > { %p157_p11 = scmp.ne.s32.totalorder %s3350_s25, %s3346_s24  ;;  %s4333_s11 = smov (!%p3537_p0, %s48_s11), %s3370_s30 }
  0x51   : > { %p4226_p12 = scmp.eq.s32.totalorder %s3602_s18, 0  ;;  %p50_p13 = scmp.ge.s32.totalorder %s4333_s11, 2 }
  0x52   : > { %p466_p1 = scmp.ne.s32.totalorder %s3342_s23, %s3338_s22  ;;  %p467_p3 = scmp.eq.s32.totalorder %s3602_s18, 3 }
  0x53   : > { %s3597_s14 = scalar_lea.hbm %s4273_s12, %s2704_s4  ;;  %s456_s4 = sadd.s32 1, %s3342_s23 }
  0x54   : > { %p3617_p2 = por %p4226_p12, %p157_p11  ;;  %s4335_s11 = smov (%p50_p13, %s4333_s11), 0 }
  0x55   : > { %4275 = sst [smem:[#allocation29_spill]] %s4335_s11  ;;  %p3624_p4 = por %p467_p3, %p466_p1 }
  0x56   : > { %p472_p0 = scmp.ne.s32.totalorder %s3338_s22, %s3334_s21  ;;  %s453_s19 = ssub.s32 %s3370_s30, %s4335_s11 }
  0x57   : > { %s4276_s24 = scalar_select %p3624_p4, 1, 0 }
  0x58   : > { %p473_p5 = scmp.eq.s32.totalorder %s2654_s9, 3  ;;  %p454_p8 = scmp.eq.s32.totalorder %s453_s19, 0 }
  0x59   : > { %4277 = sst [smem:[#allocation30_spill]] %s4276_s24  ;;  %p2655_p9 = scmp.ge.s32.totalorder %s3374_s0, 1 }
  0x5a   : > { %p3633_p10 = por %p473_p5, %p472_p0  ;;  %p480_p11 = scmp.lt.s32.totalorder %s3374_s0, 5 }
  0x5b   : > { %s3639_s16 = scalar_select %p454_p8, %s3342_s23, %s456_s4  }
  0x5c   : > { %s4278_s13 = scalar_select %p3633_p10, 1, 0 }
  0x5d   : > { %4280 = sst [smem:[#allocation32_spill]] %s3639_s16  ;;  %p3641_p13 = pnand %p2655_p9, %p480_p11 }
  0x5e   : > { %4279 = sst [smem:[#allocation31_spill]] %s4278_s13  ;;  %s2659_s26 = sshll.u32 %s3553_s1, 7 }
  0x5f   : > { %p2961_p1 = pneg %p3641_p13  ;;  %s3382_s27 = smov [#allocation4]  }
  0x60   : > { %s499_s28 = sshll.u32 %s3382_s27, 4  ;;  %s2703_s9 = sshll.u32 %s3366_s29, 11  ;;  %s500_s28 = int_to_ptr.vmem [resolvable:$true] %s499_s28 }
  0x61   : > { %p3650_p3 = pnand %p2961_p1, %p4226_p12  ;;  %s4283_s6 = sld [smem:[#allocation39_spill]] }
  0x62   : > { %s549_s12 = scalar_lea.vmem [#allocation9], %s2659_s26  ;;  %s3175_s1 = scalar_lea.vmem %s500_s28, 16 }
  0x63   : > { %s556_s11 = sshll.u32 %s549_s12, 4  ;;  %p3166_p0 = pneg %p3650_p3  ;;  %s3660_s11 = int_to_ptr.vmem [resolvable:$true] %s556_s11 }
  0x64   : > { %p3176_p5 = scmp.ne.s32.totalorder %s500_s28, %s3175_s1  ;;  %s3182_s27 = scalar_lea.vmem %s500_s28, 32 }
  0x65   : > { %p3183_p11 = scmp.lt.s32.totalorder %s500_s28, %s500_s28  ;;  %p3184_p1 = scmp.lt.s32.totalorder %s3182_s27, %s3175_s1 }
  0x66   : > { %p3178_p8 = pnand %p3176_p5, %p3166_p0 }
  0x67   : > { %s3658_s10 = scalar_lea.hbm %s4283_s6, %s2703_s9  ;;  %p3185_p12 = por %p3184_p1, %p3183_p11 }
  0x68   : > { %p3179_p9 = pneg %p3178_p8 }
  0x6a   : > { %p3186_p7 = pnand %p3185_p12, %p3179_p9 }
  0x6c   : > { %3189 = shalt.err (!%p3186_p7)
}
  0x6d   : > { %s4284_s3 = sld [smem:[#allocation36_spill]]  ;;  %s3203_s12 = scalar_lea.vmem %s3660_s11, 2048 }
  0x6e   : > { %p3204_p10 = scmp.ne.s32.totalorder %s3660_s11, %s3203_s12  ;;  %p4285_p0 = pneg %p3563_p6 }
  0x6f   : > { %s3383_s26 = smov [#allocation9]  }
  0x70   : > { %p3206_p5 = pnand %p3204_p10, %p4285_p0  ;;  %s3208_s19 = sshll.u32 %s3383_s26, 4  ;;  %s3209_s19 = int_to_ptr.vmem [resolvable:$false] %s3208_s19 }
  0x71   : > { %s3210_s1 = scalar_lea.vmem %s3209_s19, 4096  ;;  %p3211_p7 = scmp.lt.s32.totalorder %s3660_s11, %s3209_s19 }
  0x72   : > { %p3207_p8 = pneg %p3206_p5  ;;  %p3212_p12 = scmp.lt.s32.totalorder %s3210_s1, %s3203_s12 }
  0x73   : > { %2964 = dma.hbm_to_vmem [thread:$0]  (!%p3650_p3), %s4284_s3, 16, %s500_s28, [#allocation5]  }
  0x74   : > { %p3213_p9 = por %p3212_p12, %p3211_p7 }
  0x76   : > { %p3214_p11 = pnand %p3213_p9, %p3207_p8 }
  0x78   : > { %3217 = shalt.err (!%p3214_p11)
}
  0x79   : > { %s3384_s17 = smov 128   ;;  %s3385_s28 = smov 8  }
  0x7a   : > { %2971 = dma.hbm_to_vmem [thread:$0]  (!%p3563_p6), %s3658_s10, 2048, %s3660_s11, %s3569_s8, %s3384_s17, %s3384_s17, %s3385_s28  }
  0x7b   : > { %s3231_s27 = scalar_lea.vmem %s3599_s2, 8192  ;;  %p4286_p3 = pmov %p4285_p0 }
  0x7c   : > { %p3232_p10 = scmp.ne.s32.totalorder %s3599_s2, %s3231_s27  ;;  %s3386_s9 = smov [#allocation12]  }
  0x7d   : > { %s3236_s4 = sshll.u32 %s3386_s9, 4  ;;  %s3237_s4 = int_to_ptr.vmem [resolvable:$false] %s3236_s4 }
  0x7e   : > { %p3234_p1 = pnand %p3232_p10, %p4286_p3  ;;  %s3238_s12 = scalar_lea.vmem %s3237_s4, 16384 }
  0x7f   : > { %p3239_p5 = scmp.lt.s32.totalorder %s3599_s2, %s3237_s4  ;;  %p3240_p8 = scmp.lt.s32.totalorder %s3238_s12, %s3231_s27 }
  0x80   : > { %p3235_p0 = pneg %p3234_p1 }
  0x81   : > { %p3241_p7 = por %p3240_p8, %p3239_p5 }
  0x83   : > { %p3242_p12 = pnand %p3241_p7, %p3235_p0 }
  0x85   : > { %3245 = shalt.err (!%p3242_p12)
}
  0x86   : > { %2977 = dma.hbm_to_vmem [thread:$0]  (!%p3563_p6), %s3597_s14, 8192, %s3599_s2, %s3586_s7, %s3384_s17, %s3384_s17, %s3385_s28  }
  0x87   : > { %653 = sbr.rel (%p3641_p13) target bundleno = 4194 (0x1062), region = 84  ;;  %p4287_p9 = scmp.eq.s32.totalorder (!%p3641_p13), %s3602_s18, 0 }
  0x8c   : > { %3317 = dma.done.wait (%p4287_p9), [#allocation5], 16   ;;  %p4288_p11 = pmov %p4287_p9 }
  0x8d   : > { %s659_s8 = sand.u32 1, %s3602_s18   ;;  %s3699_s10 = sand.u32 1, %s3350_s25  }
  0x8e   : > { %3319 = vsyncadd (%p4288_p11), [#allocation5], 4294967280  ;;  %s2945_s5 = smul.u32 384, %s3699_s10  ;;  %s660_s11 = scalar_lea.sflag [#allocation8], %s659_s8 }
  0x90   : > { %s3702_s26 = scalar_lea.vmem [#allocation7], %s2945_s5 }
  0x91   : > { %3321 = dma.done.wait (%p3617_p2), %s660_s11, 8192  }
  0x92   : > { %3323 = vsyncadd (%p3617_p2), %s660_s11, 4294959104  ;;  %s2670_s7 = sshll.u32 %s3699_s10, 7  ;;  %s2671_s14 = sshll.u32 %s3699_s10, 9 }
  0x93   : > { %s3710_s2 = scalar_lea.vmem [#allocation9], %s2670_s7  ;;  %s678_s18 = scalar_lea.sflag [#allocation11], %s659_s8 }
  0x94   : > { %s3712_s15 = scalar_lea.vmem [#allocation10], %s2671_s14 }
  0x95   : > { %3325 = dma.done.wait (%p3617_p2), %s678_s18, 16384  }
  0x96   : > { %3327 = vsyncadd (%p3617_p2), %s678_s18, 4294950912  ;;  %s4289_s19 = sld [smem:[#allocation23_spill]]  ;;  %s4228_s17 = sand.u32 1, %s3338_s22  }
  0x97   : > { %s4290_s1 = sld [smem:[#allocation22_spill]]  ;;  %s3721_s28 = sshll.u32 %s4228_s17, 3 }
  0x98   : > { %s4291_s12 = sld [smem:[#allocation33_spill]]  ;;  %s3768_s13 = scalar_lea.vmem [#allocation12], %s2671_s14 }
  0x99   : > { %s4294_s16 = sld [smem:[#allocation38_spill]] }
  0x9a   : > { %s4295_s21 = sld [smem:[#allocation42_spill]] }
  0x9b   : > { %s4297_s7 = sld [smem:[#allocation44_spill]] }
  0x9c   : > { %p784_p6 = scmp.lt.s32.totalorder %s4289_s19, 1  ;;  %s4298_s17 = sld [smem:[#allocation47_spill]] }
  0x9d   : > { %p788_p13 = scmp.lt.s32.totalorder %s4290_s1, 1  ;;  %p2676_p2 = scmp.ne.s32.totalorder %s4290_s1, 0 }
  0x9e   : > { %s4337_s19 = smov (!%p784_p6, %s4289_s19), 1  ;;  %s4300_s4 = sld [smem:[#allocation35_spill]] (!%p2676_p2) }
  0x9f   : > { %s3727_s27 = scalar_select %p788_p13, %s4290_s1, 1 }
  0xa0   : > { %s2674_s20 = sshll.u32 %s4337_s19, 3 }
  0xa1   : > { %s787_s8 = scalar_lea.vmem %s4291_s12, %s2674_s20  ;;  %s2946_s10 = smul.u32 3, %s3727_s27 }
  0xa2   : > { %s800_s0 = scalar_lea.vmem %s4295_s21, %s3727_s27  ;;  %s2675_s9 = sshll.u32 %s3727_s27, 2 }
  0xa3   : > { %s3744_s23 = scalar_lea.vmem %s4294_s16, %s2946_s10  ;;  %s4296_s12 = sld [smem:[#allocation46_spill]] }
  0xa4   : > { %s3758_s18 = scalar_lea.vmem %s4297_s7, %s2675_s9  ;;  %s810_s25 = scalar_lea.vmem %s4298_s17, %s3727_s27 }
  0xa5   : > { %s4299_s10 = sld [smem:[#allocation48_spill]]  ;;  %s783_s21 = scalar_lea.vmem [#allocation13], %s3721_s28 }
  0xa7   : > { %817 = sbr.rel (%p2676_p2) target bundleno = 373 (0x175), region = 108 }
  0xa9   : > { %s807_s24 = scalar_lea.vmem %s4296_s12, %s3727_s27  ;;  %s4301_s12 = sld [smem:[#allocation34_spill]] (!%p2676_p2) }
  0xab   : > { %s813_s30 = scalar_lea.vmem %s4299_s10, %s3727_s27 }
  0xac   : > { %v819_v0 = vld [vmem:[%s4300_s4] sm:$0x3f]  ;;  %vm831_vm0 = vcmask 1045504   ;;  %v3387_v2 = vmov 0.0   ;;  %vm3388_vm1 = vmmov 0   ;;  %vm827_vm2 = vcmask 48128  }
  0xad   : > { %v818_v1 = vld [vmem:[%s787_s8] sm:$0xff]  ;;  %2828 = vmatprep.subr.mxu0 %v3387_v2  ;;  %2830 = vmatprep.mubr.msk.f32.mxu0 %vm3388_vm1, %v3387_v2  ;;  %v2677_v3 = vld [vmem:[#allocation4] ss:$0 sm:$0xff] }
  0xae   : > { %2829 = vmatpush3.msk.msra.mxu0 %vm831_vm0, %v819_v0 }
  0xaf   : > { %2831 = vmatmul.mubr.msk.f32.vlgmr.msra.gmra.mxu0 %vm827_vm2, %v818_v1  ;;  %v905_v5 = vld [vmem:[%s4301_s12] sm:$0xff] }
 0x16f   : > { %v901_v4 = vpop.f32.mrf.mxu0 }
 0x170   : > { %v902_v6 = vadd.f32 %v2677_v3, %v901_v4 }
 0x171   : > { %v2832_v7 = vpop.f32.mrf.mxu0 }
 0x172   : > { %v906_v8 = vadd.f32 %v905_v5, %v902_v6 }
 0x174   : > { %907 = vst [vmem:[#allocation2] sm:$0xff] %v906_v8 }
 0x175 PF: > { %v955_v9 = vld [vmem:[%s3702_s26 + $0x170] sm:$0xff]  ;;  %v954_v10 = vld [vmem:[%s3702_s26 + $0x168] sm:$0xff]  ;;  %v952_v11 = vld [vmem:[%s3702_s26 + $0x158] sm:$0xff]  ;;  %v3389_v13 = vmov 0.0   ;;  %vm3390_vm3 = vmmov 0   ;;  %v959_v59 = vlaneseq  ;;  %vm1116_vm4 = vcmask 261120  }
 0x176   : > { %974 = vmatprep.subr.mxu0 %v955_v9  ;;  %v951_v12 = vld [vmem:[%s3702_s26 + $0x150] sm:$0xff]  ;;  %1038 = vmatprep.mubr.f32.mxu0 %v3389_v13  ;;  %v949_v14 = vld [vmem:[%s3702_s26 + $0x140] sm:$0xff]  ;;  %v948_v15 = vld [vmem:[%s3702_s26 + $0x138] sm:$0xff]  ;;  %vm1193_vm5 = vcmask 64512   ;;  %s3393_s1 = smov 32   ;;  %vm1449_vm6 = vcmask 523520  }
 0x177   : > { %975 = vmatpush1.msra.mxu0 %v954_v10  ;;  %2833 = vmatprep.subr.mxu1 %v3389_v13  ;;  %v946_v16 = vld [vmem:[%s3702_s26 + $0x128] sm:$0xff]  ;;  %v945_v17 = vld [vmem:[%s3702_s26 + $0x120] sm:$0xff]  ;;  %v943_v18 = vld [vmem:[%s3702_s26 + $0x110] sm:$0xff]  ;;  %v3855_v60 = vshrl.u32 %v959_v59, 7  ;;  %vm1620_vm7 = vcmask 785920   ;;  %vm1791_vm8 = vcmask 1048320  }
 0x178   : > { %976 = vmatprep.subr.mxu0 %v952_v11  ;;  %v942_v19 = vld [vmem:[%s3702_s26 + $0x108] sm:$0xff]  ;;  %v940_v20 = vld [vmem:[%s3702_s26 + $0xf8] sm:$0xff]  ;;  %v939_v21 = vld [vmem:[%s3702_s26 + $0xf0] sm:$0xff]  ;;  %2865 = vmatprep.mubr.msk.f32.mxu1 %vm3390_vm3, %v3389_v13  ;;  %s4302_s5 = sld [smem:[#allocation40_spill]] }
 0x179   : > { %977 = vmatpush1.msra.mxu0 %v951_v12  ;;  %v937_v22 = vld [vmem:[%s3702_s26 + $0xe0] sm:$0xff]  ;;  %v936_v23 = vld [vmem:[%s3702_s26 + $0xd8] sm:$0xff]  ;;  %v934_v26 = vld [vmem:[%s3702_s26 + $0xc8] sm:$0xff]  ;;  %v961_v61 = vsub.s32 0, %v3855_v60  ;;  %v965_v63 = vsub.s32 1, %v3855_v60  ;;  %v969_v7 = vsub.s32 2, %v3855_v60 }
 0x17a   : > { %978 = vmatprep.subr.mxu0 %v949_v14  ;;  %v956_v24 = vld [vmem:[%s3702_s26 + $0x178] sm:$0xff]  ;;  %v953_v25 = vld [vmem:[%s3702_s26 + $0x160] sm:$0xff]  ;;  %v950_v28 = vld [vmem:[%s3702_s26 + $0x148] sm:$0xff]  ;;  %s4304_s3 = sld [smem:[#allocation41_spill]] }
 0x17b   : > { %979 = vmatpush1.msra.mxu0 %v948_v15  ;;  %2834 = vmatpush3.msra.mxu1 %v956_v24  ;;  %v933_v27 = vld [vmem:[%s3702_s26 + $0xc0] sm:$0xff]  ;;  %v931_v29 = vld [vmem:[%s3702_s26 + $0xb0] sm:$0xff]  ;;  %v930_v30 = vld [vmem:[%s3702_s26 + $0xa8] sm:$0xff]  ;;  %s4310_s9 = sld [smem:[#allocation22_spill]] }
 0x17c   : > { %980 = vmatprep.subr.mxu0 %v946_v16  ;;  %2835 = vmatprep.subr.mxu1 %v3389_v13  ;;  %v947_v31 = vld [vmem:[%s3702_s26 + $0x130] sm:$0xff]  ;;  %v928_v32 = vld [vmem:[%s3702_s26 + $0x98] sm:$0xff]  ;;  %v925_v35 = vld [vmem:[%s3702_s26 + $0x80] sm:$0xff] }
 0x17d   : > { %981 = vmatpush1.msra.mxu0 %v945_v17  ;;  %2836 = vmatpush3.msra.mxu1 %v953_v25  ;;  %v927_v33 = vld [vmem:[%s3702_s26 + $0x90] sm:$0xff]  ;;  %v944_v34 = vld [vmem:[%s3702_s26 + $0x118] sm:$0xff]  ;;  %v941_v37 = vld [vmem:[%s3702_s26 + $0x100] sm:$0xff] }
 0x17e   : > { %982 = vmatprep.subr.mxu0 %v943_v18  ;;  %2837 = vmatprep.subr.mxu1 %v3389_v13  ;;  %v924_v36 = vld [vmem:[%s3702_s26 + $0x78] sm:$0xff]  ;;  %v922_v38 = vld [vmem:[%s3702_s26 + $0x68] sm:$0xff]  ;;  %v921_v39 = vld [vmem:[%s3702_s26 + $0x60] sm:$0xff]  ;;  %s4303_s11 = scalar_lea.vmem %s4302_s5, %s3727_s27 }
 0x17f   : > { %983 = vmatpush1.msra.mxu0 %v942_v19  ;;  %2838 = vmatpush3.msra.mxu1 %v950_v28  ;;  %v938_v40 = vld [vmem:[%s3702_s26 + $0xe8] sm:$0xff]  ;;  %v919_v41 = vld [vmem:[%s3702_s26 + $0x50] sm:$0xff]  ;;  %v916_v44 = vld [vmem:[%s3702_s26 + $0x38] sm:$0xff] }
 0x180   : > { %984 = vmatprep.subr.mxu0 %v940_v20  ;;  %2839 = vmatprep.subr.mxu1 %v3389_v13  ;;  %v918_v42 = vld [vmem:[%s3702_s26 + $0x48] sm:$0xff]  ;;  %v935_v43 = vld [vmem:[%s3702_s26 + $0xd0] sm:$0xff]  ;;  %v932_v46 = vld [vmem:[%s3702_s26 + $0xb8] sm:$0xff]  ;;  %s4305_s6 = scalar_lea.vmem %s4304_s3, %s3727_s27 }
 0x181   : > { %985 = vmatpush1.msra.mxu0 %v939_v21  ;;  %2840 = vmatpush3.msra.mxu1 %v947_v31  ;;  %v915_v45 = vld [vmem:[%s3702_s26 + $0x30] sm:$0xff]  ;;  %v913_v47 = vld [vmem:[%s3702_s26 + $0x20] sm:$0xff]  ;;  %v912_v48 = vld [vmem:[%s3702_s26 + $0x18] sm:$0xff]  ;;  %p2698_p10 = scmp.ne.s32.totalorder %s4310_s9, 1 }
 0x182   : > { %986 = vmatprep.subr.mxu0 %v937_v22  ;;  %2841 = vmatprep.subr.mxu1 %v3389_v13  ;;  %v929_v49 = vld [vmem:[%s3702_s26 + $0xa0] sm:$0xff]  ;;  %v910_v50 = vld [vmem:[%s3702_s26 + $0x8] sm:$0xff]  ;;  %v923_v54 = vld [vmem:[%s3702_s26 + $0x70] sm:$0xff] }
 0x183   : > { %987 = vmatpush1.msra.mxu0 %v936_v23  ;;  %2842 = vmatpush3.msra.mxu1 %v944_v34  ;;  %v909_v51 = vld [vmem:[%s3702_s26] sm:$0xff]  ;;  %v926_v52 = vld [vmem:[%s3702_s26 + $0x88] sm:$0xff]  ;;  %v920_v55 = vld [vmem:[%s3702_s26 + $0x58] sm:$0xff] }
 0x184   : > { %988 = vmatprep.subr.mxu0 %v934_v26  ;;  %2843 = vmatprep.subr.mxu1 %v3389_v13  ;;  %v3832_v53 = vld [vmem:[#allocation2] sm:$0xff]  ;;  %v917_v56 = vld [vmem:[%s3702_s26 + $0x40] sm:$0xff] }
 0x185   : > { %989 = vmatpush1.msra.mxu0 %v933_v27  ;;  %2844 = vmatpush3.msra.mxu1 %v941_v37  ;;  %v914_v57 = vld [vmem:[%s3702_s26 + $0x28] sm:$0xff]  ;;  %v911_v58 = vld [vmem:[%s3702_s26 + $0x10] sm:$0xff]  ;;  %s3391_s26 = smov 96  }
 0x186   : > { %990 = vmatprep.subr.mxu0 %v931_v29  ;;  %2845 = vmatprep.subr.mxu1 %v3389_v13  ;;  %v957_v62 = vld [vmem:[%s3744_s23] sm:$0x7]  ;;  %s3392_s23 = smov 64  }
 0x187   : > { %991 = vmatpush1.msra.mxu0 %v930_v30  ;;  %2846 = vmatpush3.msra.mxu1 %v938_v40  ;;  %v962_v0 = vrot.slane %v957_v62, %v961_v61  ;;  %v966_v1 = vrot.slane %v957_v62, %v965_v63  ;;  %v970_v8 = vrot.slane %v957_v62, %v969_v7 }
 0x188   : > { %992 = vmatprep.subr.mxu0 %v928_v32  ;;  %2847 = vmatprep.subr.mxu1 %v3389_v13 }
 0x189   : > { %993 = vmatpush1.msra.mxu0 %v927_v33  ;;  %2848 = vmatpush3.msra.mxu1 %v935_v43 }
 0x18a   : > { %994 = vmatprep.subr.mxu0 %v925_v35  ;;  %2849 = vmatprep.subr.mxu1 %v3389_v13 }
 0x18b   : > { %995 = vmatpush1.msra.mxu0 %v924_v36  ;;  %2850 = vmatpush3.msra.mxu1 %v932_v46 }
 0x18c   : > { %996 = vmatprep.subr.mxu0 %v922_v38  ;;  %2851 = vmatprep.subr.mxu1 %v3389_v13 }
 0x18d   : > { %997 = vmatpush1.msra.mxu0 %v921_v39  ;;  %2852 = vmatpush3.msra.mxu1 %v929_v49 }
 0x18e   : > { %998 = vmatprep.subr.mxu0 %v919_v41  ;;  %2853 = vmatprep.subr.mxu1 %v3389_v13 }
 0x18f   : > { %999 = vmatpush1.msra.mxu0 %v918_v42  ;;  %2854 = vmatpush3.msra.mxu1 %v926_v52 }
 0x190   : > { %1000 = vmatprep.subr.mxu0 %v916_v44  ;;  %2855 = vmatprep.subr.mxu1 %v3389_v13 }
 0x191   : > { %1001 = vmatpush1.msra.mxu0 %v915_v45  ;;  %2856 = vmatpush3.msra.mxu1 %v923_v54 }
 0x192   : > { %1002 = vmatprep.subr.mxu0 %v913_v47  ;;  %2857 = vmatprep.subr.mxu1 %v3389_v13 }
 0x193   : > { %1003 = vmatpush1.msra.mxu0 %v912_v48  ;;  %2858 = vmatpush3.msra.mxu1 %v920_v55 }
 0x194   : > { %1004 = vmatprep.subr.mxu0 %v910_v50  ;;  %2859 = vmatprep.subr.mxu1 %v3389_v13 }
 0x195   : > { %1005 = vmatpush1.msra.mxu0 %v909_v51  ;;  %2860 = vmatpush3.msra.mxu1 %v917_v56 }
 0x196   : > { %1039 = vmatmul.mubr.f32.vlgmr.msra.gmra.mxu0 %v3832_v53  ;;  %2908 = vmatprep.subr.mxu0 %v3389_v13 }
 0x197   : > { %2861 = vmatprep.subr.mxu1 %v3389_v13  ;;  %2940 = vmatprep.mubr.msk.f32.mxu0 %vm3390_vm3, %v3389_v13 }
 0x198   : > { %2862 = vmatpush3.msra.mxu1 %v914_v57 }
 0x199   : > { %2863 = vmatprep.subr.mxu1 %v3389_v13 }
 0x19a   : > { %2864 = vmatpush3.msra.mxu1 %v911_v58 }
 0x19b   : > { %2866 = vmatmul.mubr.f32.vlgmr.msra.gmra.mxu1 %v3832_v53  ;;  %2868 = vmatprep.subr.mxu1 %v3389_v13 }
 0x19c   : > { %2870 = vmatprep.mubr.msk.f32.mxu1 %vm3390_vm3, %v3389_v13 }
 0x256   : > { %v1040_v2 = vpop.f32.mrf.mxu0 }
 0x257   : > { %v1041_v3 = vadd.f32 %v1040_v2, %v962_v0 }
 0x258   : > { %v1042_v4 = vpop.f32.mrf.mxu0 }
 0x259   : > { %v1043_v5 = vadd.f32 %v1042_v4, %v966_v1  ;;  %v3866_v6 = vmul.f32 0.17677669, %v1041_v3 }
 0x25b   : > { %1281 = vrot.lane.b32.xlu1 %v1043_v5, %s3391_s26  ;;  %2869 = vmatpush3.xpose.msk.msra.mxu1 %vm1116_vm4, %v1043_v5  ;;  %v1111_v9 = vpop.f32.mrf.mxu1 }
 0x25c   : > { %2873 = vmatprep.subr.mxu1 %v3389_v13  ;;  %v3878_v10 = vadd.f32 %v1111_v9, %v970_v8 }
 0x25d   : > { %v2867_v11 = vpop.f32.mrf.mxu1 }
 0x25e   : > { %2871 = vmatmul.mubr.msk.f32.vlgmr.msra.gmra.mxu1 %vm1116_vm4, %v3866_v6 }
 0x25f   : > { %1279 = vrot.lane.b32.xlu1 %v3866_v6, %s3391_s26  ;;  %2875 = vmatprep.mubr.msk.f32.mxu1 %vm3390_vm3, %v3389_v13 }
 0x260   : > { %2874 = vmatpush3.msra.mxu1 %v3878_v10 }
 0x261   : > { %2878 = vmatprep.subr.mxu1 %v3389_v13 }
 0x2cd   : > { %v1282_v23 = vpop.permute.xlu1 %1281 }
 0x2d1   : > { %v1280_v25 = vpop.permute.xlu1 %1279 }
 0x31e   : > { %v1189_v12 = vpop.f32.mrf.mxu1 }
 0x31f   : > { %v1194_v14 = vsel %vm1193_vm5, %v1189_v12, -inf }
 0x320   : > { %1195 = vmax.xlane.f32.xlu0 %v1194_v14  ;;  %v2872_v15 = vpop.f32.mrf.mxu1 }
 0x3a9   : > { %v1196_v16 = vpop.xlane.xlu0 %1195 }
 0x3aa   : > { %v1197_v17 = vsub.f32 %v1189_v12, %v1196_v16  ;;  %v1809_v16 = vld [vmem:[%s3710_s2 + $0x78] sm:$0xff] }
 0x3ab   : > { %2909 = vmatpush3.msra.mxu0 %v1809_v16  ;;  %v1950_v16 = vld [vmem:[%s3712_s15 + $0x110] sm:$0xff] }
 0x3ac   : > { %v1198_v18 = vmul.f32 1.442695, %v1197_v17  ;;  %v1808_v17 = vld [vmem:[%s3710_s2 + $0x70] sm:$0xff]  ;;  %2910 = vmatprep.subr.mxu0 %v3389_v13 }
 0x3ad   : > { %2911 = vmatpush3.msra.mxu0 %v1808_v17  ;;  %v1945_v17 = vld [vmem:[%s3712_s15 + $0xe8] sm:$0xff] }
 0x3ae   : > { %3088 = vpow2.f32 %v1198_v18  ;;  %v1807_v18 = vld [vmem:[%s3710_s2 + $0x68] sm:$0xff]  ;;  %2912 = vmatprep.subr.mxu0 %v3389_v13 }
 0x3af   : > { %2913 = vmatpush3.msra.mxu0 %v1807_v18  ;;  %v1947_v18 = vld [vmem:[%s3712_s15 + $0xf8] sm:$0xff] }
 0x3b0   : > { %2914 = vmatprep.subr.mxu0 %v3389_v13 }
 0x3bb   : > { %v3089_v19 = vpop.eup %3088 }
 0x3bc   : > { %v1200_v20 = vsel %vm1193_vm5, %v3089_v19, 0.0 }
 0x3bd   : > { %1201 = vadd.xlane.f32.xlu0 %v1200_v20  ;;  %v1805_v20 = vld [vmem:[%s3710_s2 + $0x58] sm:$0xff] }
 0x446   : > { %v1202_v21 = vpop.xlane.xlu0 %1201 }
 0x447   : > { %3090 = vrcp.f32 %v1202_v21  ;;  %v1804_v21 = vld [vmem:[%s3710_s2 + $0x50] sm:$0xff] }
 0x454   : > { %v3091_v22 = vpop.eup %3090 }
 0x455   : > { %v1204_v24 = vmul.f32 %v3091_v22, %v3089_v19  ;;  %v1806_v19 = vld [vmem:[%s3710_s2 + $0x60] sm:$0xff]  ;;  %v1803_v22 = vld [vmem:[%s3710_s2 + $0x48] sm:$0xff] }
 0x456   : > { %2915 = vmatpush3.msra.mxu0 %v1806_v19  ;;  %v1944_v19 = vld [vmem:[%s3712_s15 + $0xe0] sm:$0xff] }
 0x457   : > { %2876 = vmatmul.mubr.msk.f32.vlgmr.msra.gmra.mxu1 %vm1193_vm5, %v1204_v24  ;;  %2916 = vmatprep.subr.mxu0 %v3389_v13  ;;  %v1801_v24 = vld [vmem:[%s3710_s2 + $0x38] sm:$0xff] }
 0x458   : > { %2879 = vmatpush3.xpose.msk.msra.mxu1 %vm1116_vm4, %v1282_v23  ;;  %2880 = vmatprep.mubr.msk.f32.mxu1 %vm3390_vm3, %v3389_v13  ;;  %v1802_v23 = vld [vmem:[%s3710_s2 + $0x40] sm:$0xff] }
 0x459   : > { %2883 = vmatprep.subr.mxu1 %v3389_v13  ;;  %2917 = vmatpush3.msra.mxu0 %v1805_v20  ;;  %v1946_v20 = vld [vmem:[%s3712_s15 + $0xf0] sm:$0xff] }
 0x45a   : > { %2918 = vmatprep.subr.mxu0 %v3389_v13 }
 0x45b   : > { %2881 = vmatmul.mubr.msk.f32.vlgmr.msra.gmra.mxu1 %vm1116_vm4, %v1280_v25  ;;  %2919 = vmatpush3.msra.mxu0 %v1804_v21  ;;  %v1800_v25 = vld [vmem:[%s3710_s2 + $0x30] sm:$0xff]  ;;  %v1941_v21 = vld [vmem:[%s3712_s15 + $0xc8] sm:$0xff] }
 0x45c   : > { %2885 = vmatprep.mubr.msk.f32.mxu1 %vm3390_vm3, %v3389_v13  ;;  %2920 = vmatprep.subr.mxu0 %v3389_v13 }
 0x45d   : > { %2921 = vmatpush3.msra.mxu0 %v1803_v22  ;;  %v1943_v22 = vld [vmem:[%s3712_s15 + $0xd8] sm:$0xff] }
 0x45e   : > { %2922 = vmatprep.subr.mxu0 %v3389_v13 }
 0x45f   : > { %2923 = vmatpush3.msra.mxu0 %v1802_v23  ;;  %v1940_v23 = vld [vmem:[%s3712_s15 + $0xc0] sm:$0xff] }
 0x460   : > { %2924 = vmatprep.subr.mxu0 %v3389_v13 }
 0x461   : > { %2925 = vmatpush3.msra.mxu0 %v1801_v24  ;;  %v1942_v24 = vld [vmem:[%s3712_s15 + $0xd0] sm:$0xff] }
 0x462   : > { %2926 = vmatprep.subr.mxu0 %v3389_v13 }
 0x463   : > { %2927 = vmatpush3.msra.mxu0 %v1800_v25  ;;  %v1937_v25 = vld [vmem:[%s3712_s15 + $0xa8] sm:$0xff] }
 0x464   : > { %2928 = vmatprep.subr.mxu0 %v3389_v13 }
 0x517   : > { %v1274_v26 = vpop.f32.mrf.mxu1 }
 0x518   : > { %1278 = vst.msk [vmem:[#allocation3] sm:$0xff] %vm1116_vm4, %v1274_v26  ;;  %v1799_v26 = vld [vmem:[%s3710_s2 + $0x28] sm:$0xff] }
 0x519   : > { %v2877_v27 = vpop.f32.mrf.mxu1  ;;  %2929 = vmatpush3.msra.mxu0 %v1799_v26  ;;  %v1939_v26 = vld [vmem:[%s3712_s15 + $0xb8] sm:$0xff] }
 0x51a   : > { %v1798_v27 = vld [vmem:[%s3710_s2 + $0x20] sm:$0xff]  ;;  %2930 = vmatprep.subr.mxu0 %v3389_v13 }
 0x51b   : > { %v1353_v28 = vpop.f32.mrf.mxu1  ;;  %2931 = vmatpush3.msra.mxu0 %v1798_v27  ;;  %v1936_v27 = vld [vmem:[%s3712_s15 + $0xa0] sm:$0xff] }
 0x51c   : > { %v1357_v29 = vsel %vm1193_vm5, %v1353_v28, -inf  ;;  %2932 = vmatprep.subr.mxu0 %v3389_v13 }
 0x51d   : > { %1358 = vmax.xlane.f32.xlu0 %v1357_v29  ;;  %v2882_v30 = vpop.f32.mrf.mxu1  ;;  %v1796_v29 = vld [vmem:[%s3710_s2 + $0x10] sm:$0xff] }
 0x51e   : > { %v1795_v30 = vld [vmem:[%s3710_s2 + $0x8] sm:$0xff] }
 0x533   : > { %1369 = vrot.lane.b32.xlu0 %v3878_v10, %s3391_s26 }
 0x537   : > { %1453 = vrot.lane.b32.xlu0 %v1043_v5, %s3392_s23 }
 0x53b   : > { %1451 = vrot.lane.b32.xlu0 %v3866_v6, %s3392_s23 }
 0x5a6   : > { %v1359_v31 = vpop.xlane.xlu0 %1358 }
 0x5a7   : > { %v1360_v32 = vsub.f32 %v1353_v28, %v1359_v31  ;;  %v1797_v28 = vld [vmem:[%s3710_s2 + $0x18] sm:$0xff]  ;;  %v1794_v31 = vld [vmem:[%s3710_s2] sm:$0xff] }
 0x5a8   : > { %2933 = vmatpush3.msra.mxu0 %v1797_v28  ;;  %v1938_v28 = vld [vmem:[%s3712_s15 + $0xb0] sm:$0xff] }
 0x5a9   : > { %v1361_v33 = vmul.f32 1.442695, %v1360_v32  ;;  %2934 = vmatprep.subr.mxu0 %v3389_v13 }
 0x5aa   : > { %v1370_v34 = vpop.permute.xlu0 %1369  ;;  %2935 = vmatpush3.msra.mxu0 %v1796_v29  ;;  %v1933_v29 = vld [vmem:[%s3712_s15 + $0x88] sm:$0xff] }
 0x5ab   : > { %3092 = vpow2.f32 %v1361_v33  ;;  %2884 = vmatpush3.msra.mxu1 %v1370_v34  ;;  %2936 = vmatprep.subr.mxu0 %v3389_v13 }
 0x5ac   : > { %2888 = vmatprep.subr.mxu1 %v3389_v13  ;;  %2937 = vmatpush3.msra.mxu0 %v1795_v30  ;;  %v1935_v30 = vld [vmem:[%s3712_s15 + $0x98] sm:$0xff] }
 0x5ad   : > { %2938 = vmatprep.subr.mxu0 %v3389_v13 }
 0x5ae   : > { %v1454_v39 = vpop.permute.xlu0 %1453  ;;  %2939 = vmatpush3.msra.mxu0 %v1794_v31  ;;  %v1932_v31 = vld [vmem:[%s3712_s15 + $0x80] sm:$0xff] }
 0x5b2   : > { %v1452_v41 = vpop.permute.xlu0 %1451 }
 0x5b8   : > { %v3093_v35 = vpop.eup %3092 }
 0x5b9   : > { %v1363_v36 = vsel %vm1193_vm5, %v3093_v35, 0.0 }
 0x5ba   : > { %1364 = vadd.xlane.f32.xlu1 %v1363_v36  ;;  %v2692_v36 = vld [vmem:[%s4303_s11] ss:$0 sm:$0xff] }
 0x5cb   : > { %1540 = vrot.lane.b32.xlu1 %v3878_v10, %s3392_s23 }
 0x5cf   : > { %1624 = vrot.lane.b32.xlu1 %v1043_v5, %s3393_s1 }
 0x643   : > { %v1365_v37 = vpop.xlane.xlu1 %1364 }
 0x644   : > { %3094 = vrcp.f32 %v1365_v37 }
 0x647   : > { %v1541_v42 = vpop.permute.xlu1 %1540 }
 0x64b   : > { %v1625_v54 = vpop.permute.xlu1 %1624 }
 0x651   : > { %v3095_v38 = vpop.eup %3094 }
 0x652   : > { %v1367_v40 = vmul.f32 %v3095_v38, %v3093_v35 }
 0x654   : > { %2886 = vmatmul.mubr.msk.f32.vlgmr.msra.gmra.mxu1 %vm1193_vm5, %v1367_v40 }
 0x655   : > { %2889 = vmatpush3.xpose.msk.msra.mxu1 %vm1116_vm4, %v1454_v39  ;;  %2890 = vmatprep.mubr.msk.f32.mxu1 %vm3390_vm3, %v3389_v13 }
 0x656   : > { %2893 = vmatprep.subr.mxu1 %v3389_v13 }
 0x658   : > { %2891 = vmatmul.mubr.msk.f32.vlgmr.msra.gmra.mxu1 %vm1116_vm4, %v1452_v41  ;;  %v1977_v41 = vld [vmem:[%s3712_s15 + $0x1e8] sm:$0xff] }
 0x659   : > { %2894 = vmatpush3.msra.mxu1 %v1541_v42  ;;  %2895 = vmatprep.mubr.msk.f32.mxu1 %vm3390_vm3, %v3389_v13  ;;  %v1979_v42 = vld [vmem:[%s3712_s15 + $0x1f8] sm:$0xff] }
 0x65a   : > { %2898 = vmatprep.subr.mxu1 %v3389_v13  ;;  %2073 = vmatprep.subr.mxu0 %v1979_v42  ;;  %v1923_v42 = vld [vmem:[%s3712_s15 + $0x38] sm:$0xff] }
 0x714   : > { %v1441_v43 = vpop.f32.mrf.mxu1 }
 0x716   : > { %v2887_v44 = vpop.f32.mrf.mxu1 }
 0x717   : > { %v1973_v44 = vld [vmem:[%s3712_s15 + $0x1c8] sm:$0xff] }
 0x718   : > { %v1525_v45 = vpop.f32.mrf.mxu1 }
 0x719   : > { %v1529_v46 = vsel %vm1193_vm5, %v1525_v45, -inf }
 0x71a   : > { %1530 = vmax.xlane.f32.xlu0 %v1529_v46  ;;  %v2892_v47 = vpop.f32.mrf.mxu1  ;;  %v1972_v46 = vld [vmem:[%s3712_s15 + $0x1c0] sm:$0xff] }
 0x71b   : > { %v1969_v47 = vld [vmem:[%s3712_s15 + $0x1a8] sm:$0xff] }
 0x7a3   : > { %v1531_v48 = vpop.xlane.xlu0 %1530 }
 0x7a4   : > { %v1532_v49 = vsub.f32 %v1525_v45, %v1531_v48  ;;  %v1975_v45 = vld [vmem:[%s3712_s15 + $0x1d8] sm:$0xff] }
 0x7a5   : > { %v1971_v48 = vld [vmem:[%s3712_s15 + $0x1b8] sm:$0xff] }
 0x7a6   : > { %v1533_v50 = vmul.f32 1.442695, %v1532_v49  ;;  %v1968_v49 = vld [vmem:[%s3712_s15 + $0x1a0] sm:$0xff] }
 0x7a8   : > { %3096 = vpow2.f32 %v1533_v50  ;;  %v1970_v50 = vld [vmem:[%s3712_s15 + $0x1b0] sm:$0xff] }
 0x7b5   : > { %v3097_v51 = vpop.eup %3096 }
 0x7b6   : > { %v1535_v52 = vsel %vm1193_vm5, %v3097_v51, 0.0 }
 0x7b7   : > { %1536 = vadd.xlane.f32.xlu1 %v1535_v52  ;;  %v1967_v52 = vld [vmem:[%s3712_s15 + $0x198] sm:$0xff] }
 0x7c8   : > { %1622 = vrot.lane.b32.xlu1 %v3866_v6, %s3393_s1 }
 0x840   : > { %v1537_v55 = vpop.xlane.xlu1 %1536 }
 0x841   : > { %3098 = vrcp.f32 %v1537_v55  ;;  %v1966_v55 = vld [vmem:[%s3712_s15 + $0x190] sm:$0xff] }
 0x844   : > { %v1623_v58 = vpop.permute.xlu1 %1622 }
 0x84e   : > { %v3099_v56 = vpop.eup %3098 }
 0x84f   : > { %v1539_v57 = vmul.f32 %v3099_v56, %v3097_v51  ;;  %v1965_v51 = vld [vmem:[%s3712_s15 + $0x188] sm:$0xff] }
 0x851   : > { %2896 = vmatmul.mubr.msk.f32.vlgmr.msra.gmra.mxu1 %vm1193_vm5, %v1539_v57 }
 0x852   : > { %2899 = vmatpush3.xpose.msk.msra.mxu1 %vm1116_vm4, %v1625_v54  ;;  %2900 = vmatprep.mubr.msk.f32.mxu1 %vm3390_vm3, %v3389_v13  ;;  %v1964_v54 = vld [vmem:[%s3712_s15 + $0x180] sm:$0xff] }
 0x853   : > { %2903 = vmatprep.subr.mxu1 %v3389_v13 }
 0x855   : > { %2901 = vmatmul.mubr.msk.f32.vlgmr.msra.gmra.mxu1 %vm1116_vm4, %v1623_v58 }
 0x856   : > { %2905 = vmatprep.mubr.msk.f32.mxu1 %vm3390_vm3, %v3389_v13 }
 0x911   : > { %v1612_v59 = vpop.f32.mrf.mxu1 }
 0x913   : > { %v2897_v62 = vpop.f32.mrf.mxu1 }
 0x914   : > { %v1961_v62 = vld [vmem:[%s3712_s15 + $0x168] sm:$0xff] }
 0x915   : > { %v1696_v0 = vpop.f32.mrf.mxu1 }
 0x916   : > { %v1700_v1 = vsel %vm1193_vm5, %v1696_v0, -inf }
 0x917   : > { %1701 = vmax.xlane.f32.xlu0 %v1700_v1  ;;  %v2902_v2 = vpop.f32.mrf.mxu1  ;;  %v1960_v1 = vld [vmem:[%s3712_s15 + $0x160] sm:$0xff] }
 0x918   : > { %v1962_v2 = vld [vmem:[%s3712_s15 + $0x170] sm:$0xff] }
 0x92d   : > { %1711 = vrot.lane.b32.xlu0 %v3878_v10, %s3393_s1 }
 0x931   : > { %1446 = vrot.lane.b32.xlu0 %v1441_v43, %s3393_s1  ;;  %v1978_v43 = vld [vmem:[%s3712_s15 + $0x1f0] sm:$0xff] }
 0x935   : > { %1617 = vrot.lane.b32.xlu0 %v1612_v59, %s3392_s23 }
 0x9a0   : > { %v1702_v3 = vpop.xlane.xlu0 %1701 }
 0x9a1   : > { %v1703_v4 = vsub.f32 %v1696_v0, %v1702_v3  ;;  %v1963_v0 = vld [vmem:[%s3712_s15 + $0x178] sm:$0xff]  ;;  %v1957_v3 = vld [vmem:[%s3712_s15 + $0x148] sm:$0xff] }
 0x9a3   : > { %v1704_v5 = vmul.f32 1.442695, %v1703_v4  ;;  %v1959_v4 = vld [vmem:[%s3712_s15 + $0x158] sm:$0xff] }
 0x9a4   : > { %v1712_v6 = vpop.permute.xlu0 %1711 }
 0x9a5   : > { %3100 = vpow2.f32 %v1704_v5  ;;  %2904 = vmatpush3.msra.mxu1 %v1712_v6  ;;  %v1956_v5 = vld [vmem:[%s3712_s15 + $0x140] sm:$0xff]  ;;  %v1958_v6 = vld [vmem:[%s3712_s15 + $0x150] sm:$0xff] }
 0x9a6   : > { %2002 = vmatprep.subr.mxu1 %v1977_v41  ;;  %v1921_v41 = vld [vmem:[%s3712_s15 + $0x28] sm:$0xff] }
 0x9a8   : > { %v1447_v8 = vpop.permute.xlu0 %1446 }
 0x9a9   : > { %1450 = vst.msk [vmem:[#allocation3] sm:$0xff] %vm1449_vm6, %v1447_v8  ;;  %v1953_v8 = vld [vmem:[%s3712_s15 + $0x128] sm:$0xff] }
 0x9ac   : > { %v1618_v9 = vpop.permute.xlu0 %1617 }
 0x9ad   : > { %1621 = vst.msk [vmem:[#allocation3] sm:$0xff] %vm1620_vm7, %v1618_v9  ;;  %v1955_v9 = vld [vmem:[%s3712_s15 + $0x138] sm:$0xff] }
 0x9b2   : > { %v3101_v10 = vpop.eup %3100 }
 0x9b3   : > { %v1706_v11 = vsel %vm1193_vm5, %v3101_v10, 0.0 }
 0x9b4   : > { %1707 = vadd.xlane.f32.xlu1 %v1706_v11  ;;  %v1954_v11 = vld [vmem:[%s3712_s15 + $0x130] sm:$0xff] }
 0xa3d   : > { %v1708_v12 = vpop.xlane.xlu1 %1707 }
 0xa3e   : > { %3102 = vrcp.f32 %v1708_v12  ;;  %v1949_v12 = vld [vmem:[%s3712_s15 + $0x108] sm:$0xff] }
 0xa4b   : > { %v3103_v14 = vpop.eup %3102 }
 0xa4c   : > { %v1710_v15 = vmul.f32 %v3103_v14, %v3101_v10  ;;  %v1952_v10 = vld [vmem:[%s3712_s15 + $0x120] sm:$0xff]  ;;  %v1951_v14 = vld [vmem:[%s3712_s15 + $0x118] sm:$0xff] }
 0xa4e   : > { %2906 = vmatmul.mubr.msk.f32.vlgmr.msra.gmra.mxu1 %vm1193_vm5, %v1710_v15  ;;  %v1948_v15 = vld [vmem:[%s3712_s15 + $0x100] sm:$0xff] }
 0xa4f   : > { %2066 = vmatprep.mubr.f32.mxu1 %v3389_v13 }
 0xb0e   : > { %v1783_v32 = vpop.f32.mrf.mxu1 }
 0xb0f   : > { %1788 = vrot.lane.b32.xlu0 %v1783_v32, %s3391_s26  ;;  %v1934_v32 = vld [vmem:[%s3712_s15 + $0x90] sm:$0xff] }
 0xb10   : > { %v2907_v33 = vpop.f32.mrf.mxu1 }
 0xb11   : > { %v1929_v33 = vld [vmem:[%s3712_s15 + $0x68] sm:$0xff] }
 0xb81   : > { %v1789_v34 = vpop.permute.xlu0 %1788 }
 0xb82   : > { %1792 = vst.msk [vmem:[#allocation3] sm:$0xff] %vm1791_vm8, %v1789_v34  ;;  %v1931_v34 = vld [vmem:[%s3712_s15 + $0x78] sm:$0xff] }
 0xb89   : > { %v1793_v35 = vld [vmem:[#allocation3] sm:$0xff] }
 0xb8a   : > { %2941 = vmatmul.mubr.f32.vlgmr.msra.gmra.mxu0 %v1793_v35  ;;  %v1928_v35 = vld [vmem:[%s3712_s15 + $0x60] sm:$0xff] }
 0xb8b   : > { %2137 = vmatprep.mubr.f32.mxu0 %v3389_v13  ;;  %v1976_v13 = vld [vmem:[%s3712_s15 + $0x1e0] sm:$0xff]  ;;  %2074 = vmatpush1.msra.mxu0 %v1978_v43  ;;  %v1922_v43 = vld [vmem:[%s3712_s15 + $0x30] sm:$0xff] }
 0xb8c   : > { %2003 = vmatpush1.msra.mxu1 %v1976_v13  ;;  %2075 = vmatprep.subr.mxu0 %v1975_v45  ;;  %v1920_v13 = vld [vmem:[%s3712_s15 + $0x20] sm:$0xff]  ;;  %v1919_v45 = vld [vmem:[%s3712_s15 + $0x18] sm:$0xff] }
 0xb8d   : > { %2004 = vmatprep.subr.mxu1 %v1973_v44  ;;  %v1917_v44 = vld [vmem:[%s3712_s15 + $0x8] sm:$0xff] }
 0xb8e   : > { %2005 = vmatpush1.msra.mxu1 %v1972_v46  ;;  %v1916_v46 = vld [vmem:[%s3712_s15] sm:$0xff] }
 0xb8f   : > { %2006 = vmatprep.subr.mxu1 %v1969_v47  ;;  %v2179_v47 = vld [vmem:[%s3768_s13 + $0xf8] sm:$0xff] }
 0xb90   : > { %2007 = vmatpush1.msra.mxu1 %v1968_v49 }
 0xb91   : > { %2008 = vmatprep.subr.mxu1 %v1965_v51 }
 0xb92   : > { %2009 = vmatpush1.msra.mxu1 %v1964_v54  ;;  %v2693_v54 = vld [vmem:[%s4305_s6] ss:$0 sm:$0xff] }
 0xb93   : > { %2010 = vmatprep.subr.mxu1 %v1961_v62  ;;  %v2163_v62 = vld [vmem:[%s3768_s13 + $0x78] sm:$0xff] }
 0xb94   : > { %2011 = vmatpush1.msra.mxu1 %v1960_v1  ;;  %v2178_v1 = vld [vmem:[%s3768_s13 + $0xf0] sm:$0xff] }
 0xb95   : > { %2012 = vmatprep.subr.mxu1 %v1957_v3  ;;  %v2194_v3 = vld [vmem:[%s3768_s13 + $0x170] sm:$0xff] }
 0xb96   : > { %2013 = vmatpush1.msra.mxu1 %v1956_v5  ;;  %v2209_v5 = vld [vmem:[%s3768_s13 + $0x1e8] sm:$0xff] }
 0xb97   : > { %2014 = vmatprep.subr.mxu1 %v1953_v8  ;;  %v2193_v8 = vld [vmem:[%s3768_s13 + $0x168] sm:$0xff] }
 0xb98   : > { %2015 = vmatpush1.msra.mxu1 %v1952_v10  ;;  %v2208_v10 = vld [vmem:[%s3768_s13 + $0x1e0] sm:$0xff] }
 0xb99   : > { %2016 = vmatprep.subr.mxu1 %v1949_v12  ;;  %v2192_v12 = vld [vmem:[%s3768_s13 + $0x160] sm:$0xff] }
 0xb9a   : > { %2017 = vmatpush1.msra.mxu1 %v1948_v15  ;;  %v2207_v15 = vld [vmem:[%s3768_s13 + $0x1d8] sm:$0xff] }
 0xb9b   : > { %2018 = vmatprep.subr.mxu1 %v1945_v17  ;;  %v2191_v17 = vld [vmem:[%s3768_s13 + $0x158] sm:$0xff] }
 0xb9c   : > { %2019 = vmatpush1.msra.mxu1 %v1944_v19  ;;  %v2206_v19 = vld [vmem:[%s3768_s13 + $0x1d0] sm:$0xff] }
 0xb9d   : > { %2020 = vmatprep.subr.mxu1 %v1941_v21  ;;  %v2190_v21 = vld [vmem:[%s3768_s13 + $0x150] sm:$0xff] }
 0xb9e   : > { %2021 = vmatpush1.msra.mxu1 %v1940_v23  ;;  %v2205_v23 = vld [vmem:[%s3768_s13 + $0x1c8] sm:$0xff] }
 0xb9f   : > { %2022 = vmatprep.subr.mxu1 %v1937_v25  ;;  %v2189_v25 = vld [vmem:[%s3768_s13 + $0x148] sm:$0xff] }
 0xba0   : > { %2023 = vmatpush1.msra.mxu1 %v1936_v27  ;;  %v2204_v27 = vld [vmem:[%s3768_s13 + $0x1c0] sm:$0xff] }
 0xba1   : > { %2024 = vmatprep.subr.mxu1 %v1933_v29  ;;  %v2188_v29 = vld [vmem:[%s3768_s13 + $0x140] sm:$0xff] }
 0xba2   : > { %2025 = vmatpush1.msra.mxu1 %v1932_v31  ;;  %v2203_v31 = vld [vmem:[%s3768_s13 + $0x1b8] sm:$0xff] }
 0xba3   : > { %2026 = vmatprep.subr.mxu1 %v1929_v33  ;;  %v2187_v33 = vld [vmem:[%s3768_s13 + $0x138] sm:$0xff] }
 0xba4   : > { %2027 = vmatpush1.msra.mxu1 %v1928_v35  ;;  %v2202_v35 = vld [vmem:[%s3768_s13 + $0x1b0] sm:$0xff] }
 0xc4a   : > { %v1883_v37 = vpop.f32.mrf.mxu0 }
 0xc4b   : > { %v1884_v38 = vadd.f32 %v2692_v36, %v1883_v37  ;;  %v1930_v36 = vld [vmem:[%s3712_s15 + $0x70] sm:$0xff]  ;;  %v1925_v37 = vld [vmem:[%s3712_s15 + $0x48] sm:$0xff] }
 0xc4c   : > { %v2942_v39 = vpop.f32.mrf.mxu0  ;;  %2028 = vmatprep.subr.mxu1 %v1925_v37  ;;  %v2186_v37 = vld [vmem:[%s3768_s13 + $0x130] sm:$0xff] }
 0xc4d   : > { %v1887_v40 = vadd.f32 %v1884_v38, %v3832_v53  ;;  %v1974_v53 = vld [vmem:[%s3712_s15 + $0x1d0] sm:$0xff]  ;;  %v1927_v38 = vld [vmem:[%s3712_s15 + $0x58] sm:$0xff]  ;;  %v1924_v39 = vld [vmem:[%s3712_s15 + $0x40] sm:$0xff] }
 0xc4e   : > { %2076 = vmatpush1.msra.mxu0 %v1974_v53  ;;  %2029 = vmatpush1.msra.mxu1 %v1924_v39  ;;  %v1918_v53 = vld [vmem:[%s3712_s15 + $0x10] sm:$0xff]  ;;  %v2201_v39 = vld [vmem:[%s3768_s13 + $0x1a8] sm:$0xff] }
 0xc4f   : > { %1890 = vadd.xlane.f32.xlu1 %v1887_v40  ;;  %2077 = vmatprep.subr.mxu0 %v1971_v48  ;;  %v2211_v48 = vld [vmem:[%s3768_s13 + $0x1f8] sm:$0xff] }
 0xc50   : > { %2078 = vmatpush1.msra.mxu0 %v1970_v50  ;;  %2030 = vmatprep.subr.mxu1 %v1921_v41  ;;  %v2185_v41 = vld [vmem:[%s3768_s13 + $0x128] sm:$0xff] }
 0xc51   : > { %2079 = vmatprep.subr.mxu0 %v1967_v52  ;;  %2031 = vmatpush1.msra.mxu1 %v1920_v13  ;;  %v2200_v13 = vld [vmem:[%s3768_s13 + $0x1a0] sm:$0xff] }
 0xc52   : > { %2080 = vmatpush1.msra.mxu0 %v1966_v55  ;;  %2032 = vmatprep.subr.mxu1 %v1917_v44  ;;  %v2184_v44 = vld [vmem:[%s3768_s13 + $0x120] sm:$0xff] }
 0xc53   : > { %2081 = vmatprep.subr.mxu0 %v1963_v0  ;;  %2033 = vmatpush1.msra.mxu1 %v1916_v46  ;;  %v2195_v0 = vld [vmem:[%s3768_s13 + $0x178] sm:$0xff] }
 0xc54   : > { %2082 = vmatpush1.msra.mxu0 %v1962_v2  ;;  %2758 = vmatprep.subr.mxu1 %v2179_v47  ;;  %v2210_v2 = vld [vmem:[%s3768_s13 + $0x1f0] sm:$0xff]  ;;  %v2199_v46 = vld [vmem:[%s3768_s13 + $0x198] sm:$0xff] }
 0xc55   : > { %2083 = vmatprep.subr.mxu0 %v1959_v4  ;;  %v2177_v4 = vld [vmem:[%s3768_s13 + $0xe8] sm:$0xff]  ;;  %v2183_v47 = vld [vmem:[%s3768_s13 + $0x118] sm:$0xff] }
 0xc56   : > { %2084 = vmatpush1.msra.mxu0 %v1958_v6  ;;  %v2161_v6 = vld [vmem:[%s3768_s13 + $0x68] sm:$0xff] }
 0xc57   : > { %2085 = vmatprep.subr.mxu0 %v1955_v9  ;;  %v2176_v9 = vld [vmem:[%s3768_s13 + $0xe0] sm:$0xff] }
 0xc58   : > { %2086 = vmatpush1.msra.mxu0 %v1954_v11  ;;  %v2160_v11 = vld [vmem:[%s3768_s13 + $0x60] sm:$0xff] }
 0xc59   : > { %2087 = vmatprep.subr.mxu0 %v1951_v14  ;;  %v2175_v14 = vld [vmem:[%s3768_s13 + $0xd8] sm:$0xff] }
 0xc5a   : > { %2088 = vmatpush1.msra.mxu0 %v1950_v16  ;;  %v2159_v16 = vld [vmem:[%s3768_s13 + $0x58] sm:$0xff] }
 0xc5b   : > { %2089 = vmatprep.subr.mxu0 %v1947_v18  ;;  %v2174_v18 = vld [vmem:[%s3768_s13 + $0xd0] sm:$0xff] }
 0xc5c   : > { %2090 = vmatpush1.msra.mxu0 %v1946_v20  ;;  %v2158_v20 = vld [vmem:[%s3768_s13 + $0x50] sm:$0xff] }
 0xc5d   : > { %2091 = vmatprep.subr.mxu0 %v1943_v22  ;;  %v2173_v22 = vld [vmem:[%s3768_s13 + $0xc8] sm:$0xff] }
 0xc5e   : > { %2092 = vmatpush1.msra.mxu0 %v1942_v24  ;;  %v2157_v24 = vld [vmem:[%s3768_s13 + $0x48] sm:$0xff] }
 0xc5f   : > { %2093 = vmatprep.subr.mxu0 %v1939_v26  ;;  %v2172_v26 = vld [vmem:[%s3768_s13 + $0xc0] sm:$0xff] }
 0xc60   : > { %2094 = vmatpush1.msra.mxu0 %v1938_v28  ;;  %v2156_v28 = vld [vmem:[%s3768_s13 + $0x40] sm:$0xff] }
 0xc61   : > { %2095 = vmatprep.subr.mxu0 %v1935_v30  ;;  %v2171_v30 = vld [vmem:[%s3768_s13 + $0xb8] sm:$0xff] }
 0xc62   : > { %2096 = vmatpush1.msra.mxu0 %v1934_v32  ;;  %v2155_v32 = vld [vmem:[%s3768_s13 + $0x38] sm:$0xff] }
 0xc63   : > { %2097 = vmatprep.subr.mxu0 %v1931_v34  ;;  %v2170_v34 = vld [vmem:[%s3768_s13 + $0xb0] sm:$0xff] }
 0xc64   : > { %2098 = vmatpush1.msra.mxu0 %v1930_v36  ;;  %v2154_v36 = vld [vmem:[%s3768_s13 + $0x30] sm:$0xff] }
 0xc65   : > { %2099 = vmatprep.subr.mxu0 %v1927_v38  ;;  %v2169_v38 = vld [vmem:[%s3768_s13 + $0xa8] sm:$0xff] }
 0xcd8   : > { %v1891_v56 = vpop.xlane.xlu1 %1890 }
 0xcd9   : > { %v1893_v57 = vmul.f32 0.0078125, %v1891_v56  ;;  %v2694_v56 = vld [vmem:[%s800_s0] ss:$0 sm:$0xff] }
 0xcdb   : > { %v3988_v58 = vsub.f32 %v1887_v40, %v1893_v57  ;;  %v1926_v40 = vld [vmem:[%s3712_s15 + $0x50] sm:$0xff] }
 0xcdc   : > { %2100 = vmatpush1.msra.mxu0 %v1926_v40  ;;  %v2153_v40 = vld [vmem:[%s3768_s13 + $0x28] sm:$0xff] }
 0xcdd   : > { %v1895_v59 = vmul.f32 %v3988_v58, %v3988_v58  ;;  %2101 = vmatprep.subr.mxu0 %v1923_v42  ;;  %v2168_v42 = vld [vmem:[%s3768_s13 + $0xa0] sm:$0xff] }
 0xcde   : > { %2102 = vmatpush1.msra.mxu0 %v1922_v43  ;;  %v2152_v43 = vld [vmem:[%s3768_s13 + $0x20] sm:$0xff] }
 0xcdf   : > { %1896 = vadd.xlane.f32.xlu0 %v1895_v59  ;;  %2103 = vmatprep.subr.mxu0 %v1919_v45  ;;  %v2167_v45 = vld [vmem:[%s3768_s13 + $0x98] sm:$0xff] }
 0xce0   : > { %2104 = vmatpush1.msra.mxu0 %v1918_v53  ;;  %v2151_v53 = vld [vmem:[%s3768_s13 + $0x18] sm:$0xff] }
 0xce1   : > { %2793 = vmatprep.subr.mxu0 %v2211_v48  ;;  %v2166_v48 = vld [vmem:[%s3768_s13 + $0x90] sm:$0xff] }
 0xd68   : > { %v1897_v49 = vpop.xlane.xlu0 %1896 }
 0xd69   : > { %v1898_v50 = vmul.f32 0.0078125, %v1897_v49  ;;  %v2198_v49 = vld [vmem:[%s3768_s13 + $0x190] sm:$0xff] }
 0xd6b   : > { %v1899_v51 = vadd.f32 1e-05, %v1898_v50  ;;  %v2150_v50 = vld [vmem:[%s3768_s13 + $0x10] sm:$0xff] }
 0xd6d   : > { %3104 = vrsqrt.f32 %v1899_v51  ;;  %v2182_v51 = vld [vmem:[%s3768_s13 + $0x110] sm:$0xff] }
 0xd7a   : > { %v3105_v52 = vpop.eup %3104 }
 0xd7b   : > { %v1901_v55 = vmul.f32 %v3105_v52, %v3988_v58  ;;  %v2162_v58 = vld [vmem:[%s3768_s13 + $0x70] sm:$0xff]  ;;  %v2165_v52 = vld [vmem:[%s3768_s13 + $0x88] sm:$0xff] }
 0xd7d   : > { %v1908_v57 = vmul.f32 %v2693_v54, %v1901_v55  ;;  %v2197_v54 = vld [vmem:[%s3768_s13 + $0x188] sm:$0xff] }
 0xd7e   : > { %v2149_v55 = vld [vmem:[%s3768_s13 + $0x8] sm:$0xff] }
 0xd7f   : > { %v4053_v59 = vadd.f32 %v2694_v56, %v1908_v57  ;;  %v2181_v56 = vld [vmem:[%s3768_s13 + $0x108] sm:$0xff]  ;;  %v2164_v57 = vld [vmem:[%s3768_s13 + $0x80] sm:$0xff] }
 0xd81   : > { %2067 = vmatmul.mubr.f32.vlgmr.msra.gmra.mxu1 %v4053_v59  ;;  %2138 = vmatmul.mubr.f32.vlgmr.msra.gmra.mxu0 %v4053_v59 }
 0xd82   : > { %2759 = vmatpush3.msra.mxu1 %v2163_v62  ;;  %2794 = vmatpush3.msra.mxu0 %v2195_v0  ;;  %v2196_v62 = vld [vmem:[%s3768_s13 + $0x180] sm:$0xff] }
 0xd83   : > { %2760 = vmatprep.subr.mxu1 %v2178_v1  ;;  %2795 = vmatprep.subr.mxu0 %v2210_v2  ;;  %v2148_v0 = vld [vmem:[%s3768_s13] sm:$0xff]  ;;  %v1980_v2 = vld [vmem:[%s3758_s18] sm:$0xf] }
 0xd84   : > { %2761 = vmatpush3.msra.mxu1 %v2162_v58  ;;  %2796 = vmatpush3.msra.mxu0 %v2194_v3  ;;  %v2180_v1 = vld [vmem:[%s3768_s13 + $0x100] sm:$0xff]  ;;  %v1996_v58 = vsub.s32 3, %v3855_v60  ;;  %v1985_v3 = vrot.slane %v1980_v2, %v961_v61 }
 0xd85   : > { %2762 = vmatprep.subr.mxu1 %v2177_v4  ;;  %2797 = vmatprep.subr.mxu0 %v2209_v5  ;;  %v1993_v4 = vrot.slane %v1980_v2, %v969_v7  ;;  %v1989_v5 = vrot.slane %v1980_v2, %v965_v63  ;;  %v2695_v7 = vld [vmem:[%s807_s24] ss:$0 sm:$0xff] }
 0xd86   : > { %2763 = vmatpush3.msra.mxu1 %v2161_v6  ;;  %2798 = vmatpush3.msra.mxu0 %v2193_v8  ;;  %v1997_v6 = vrot.slane %v1980_v2, %v1996_v58 }
 0xd87   : > { %2764 = vmatprep.subr.mxu1 %v2176_v9  ;;  %2799 = vmatprep.subr.mxu0 %v2208_v10 }
 0xd88   : > { %2765 = vmatpush3.msra.mxu1 %v2160_v11  ;;  %2800 = vmatpush3.msra.mxu0 %v2192_v12 }
 0xd89   : > { %2766 = vmatprep.subr.mxu1 %v2175_v14  ;;  %2801 = vmatprep.subr.mxu0 %v2207_v15 }
 0xd8a   : > { %2767 = vmatpush3.msra.mxu1 %v2159_v16  ;;  %2802 = vmatpush3.msra.mxu0 %v2191_v17 }
 0xd8b   : > { %2768 = vmatprep.subr.mxu1 %v2174_v18  ;;  %2803 = vmatprep.subr.mxu0 %v2206_v19 }
 0xd8c   : > { %2769 = vmatpush3.msra.mxu1 %v2158_v20  ;;  %2804 = vmatpush3.msra.mxu0 %v2190_v21 }
 0xd8d   : > { %2770 = vmatprep.subr.mxu1 %v2173_v22  ;;  %2805 = vmatprep.subr.mxu0 %v2205_v23 }
 0xd8e   : > { %2771 = vmatpush3.msra.mxu1 %v2157_v24  ;;  %2806 = vmatpush3.msra.mxu0 %v2189_v25 }
 0xd8f   : > { %2772 = vmatprep.subr.mxu1 %v2172_v26  ;;  %2807 = vmatprep.subr.mxu0 %v2204_v27 }
 0xd90   : > { %2773 = vmatpush3.msra.mxu1 %v2156_v28  ;;  %2808 = vmatpush3.msra.mxu0 %v2188_v29 }
 0xd91   : > { %2774 = vmatprep.subr.mxu1 %v2171_v30  ;;  %2809 = vmatprep.subr.mxu0 %v2203_v31 }
 0xd92   : > { %2775 = vmatpush3.msra.mxu1 %v2155_v32  ;;  %2810 = vmatpush3.msra.mxu0 %v2187_v33 }
 0xd93   : > { %2776 = vmatprep.subr.mxu1 %v2170_v34  ;;  %2811 = vmatprep.subr.mxu0 %v2202_v35  ;;  %v2696_v35 = vld [vmem:[%s810_s25] ss:$0 sm:$0xff] }
 0xd94   : > { %2777 = vmatpush3.msra.mxu1 %v2154_v36  ;;  %2812 = vmatpush3.msra.mxu0 %v2186_v37 }
 0xd95   : > { %2778 = vmatprep.subr.mxu1 %v2169_v38  ;;  %2813 = vmatprep.subr.mxu0 %v2201_v39 }
 0xd96   : > { %2779 = vmatpush3.msra.mxu1 %v2153_v40  ;;  %2814 = vmatpush3.msra.mxu0 %v2185_v41 }
 0xd97   : > { %2780 = vmatprep.subr.mxu1 %v2168_v42  ;;  %2815 = vmatprep.subr.mxu0 %v2200_v13 }
 0xd98   : > { %2781 = vmatpush3.msra.mxu1 %v2152_v43  ;;  %2816 = vmatpush3.msra.mxu0 %v2184_v44 }
 0xd99   : > { %2782 = vmatprep.subr.mxu1 %v2167_v45  ;;  %2817 = vmatprep.subr.mxu0 %v2199_v46 }
 0xd9a   : > { %2783 = vmatpush3.msra.mxu1 %v2151_v53  ;;  %2818 = vmatpush3.msra.mxu0 %v2183_v47 }
 0xd9b   : > { %2784 = vmatprep.subr.mxu1 %v2166_v48  ;;  %2819 = vmatprep.subr.mxu0 %v2198_v49 }
 0xd9c   : > { %2785 = vmatpush3.msra.mxu1 %v2150_v50  ;;  %2820 = vmatpush3.msra.mxu0 %v2182_v51 }
 0xd9d   : > { %2786 = vmatprep.subr.mxu1 %v2165_v52  ;;  %2821 = vmatprep.subr.mxu0 %v2197_v54 }
 0xd9e   : > { %2787 = vmatpush3.msra.mxu1 %v2149_v55  ;;  %2822 = vmatpush3.msra.mxu0 %v2181_v56 }
 0xd9f   : > { %2788 = vmatprep.subr.mxu1 %v2164_v57  ;;  %2823 = vmatprep.subr.mxu0 %v2196_v62 }
 0xda0   : > { %2789 = vmatpush3.msra.mxu1 %v2148_v0  ;;  %2824 = vmatpush3.msra.mxu0 %v2180_v1 }
 0xe41   : > { %v2068_v8 = vpop.f32.mrf.mxu1  ;;  %v2139_v9 = vpop.f32.mrf.mxu0 }
 0xe42   : > { %v2069_v10 = vadd.f32 %v2068_v8, %v1985_v3  ;;  %v2140_v11 = vadd.f32 %v2139_v9, %v1993_v4 }
 0xe43   : > { %v2070_v12 = vpop.f32.mrf.mxu1  ;;  %v2141_v14 = vpop.f32.mrf.mxu0 }
 0xe44   : > { %v2071_v15 = vadd.f32 %v2070_v12, %v1989_v5  ;;  %v2142_v16 = vadd.f32 %v2141_v14, %v1997_v6  ;;  %v2144_v19 = vmax.f32 %v2069_v10, 0.0  ;;  %v2146_v61 = vmax.f32 %v2140_v11, 0.0 }
 0xe46   : > { %v2145_v17 = vmax.f32 %v2071_v15, 0.0  ;;  %v2147_v18 = vmax.f32 %v2142_v16, 0.0 }
 0xe48   : > { %2283 = vmatprep.mubr.f32.mxu1 %v2145_v17  ;;  %2353 = vmatprep.mubr.f32.mxu0 %v2147_v18 }
 0xe49   : > { %2284 = vmatmul.mubr.f32.vlgmr.msra.gmra.mxu1 %v2144_v19  ;;  %2354 = vmatmul.mubr.f32.vlgmr.msra.gmra.mxu0 %v2146_v61 }
 0xf09   : > { %v2790_v60 = vpop.f32.mrf.mxu1  ;;  %v2825_v63 = vpop.f32.mrf.mxu0 }
 0xf0b   : > { %v2791_v20 = vpop.f32.mrf.mxu1  ;;  %v2826_v21 = vpop.f32.mrf.mxu0 }
 0xf0c   : > { %v2792_v22 = vadd.f32 %v2791_v20, %v2790_v60  ;;  %v2827_v24 = vadd.f32 %v2826_v21, %v2825_v63 }
 0xf0e   : > { %v2286_v23 = vadd.f32 %v2792_v22, %v2695_v7 }
 0xf10   : > { %v2356_v25 = vadd.f32 %v2827_v24, %v2286_v23 }
 0xf12   : > { %v2359_v26 = vadd.f32 %v2356_v25, %v4053_v59  ;;  %v2697_v59 = vld [vmem:[%s813_s30] ss:$0 sm:$0xff] }
 0xf14   : > { %2362 = vadd.xlane.f32.xlu1 %v2359_v26 }
 0xf9d   : > { %v2363_v27 = vpop.xlane.xlu1 %2362 }
 0xf9e   : > { %v2364_v28 = vmul.f32 0.0078125, %v2363_v27 }
 0xfa0   : > { %v2365_v29 = vsub.f32 %v2359_v26, %v2364_v28 }
 0xfa2   : > { %v2366_v30 = vmul.f32 %v2365_v29, %v2365_v29 }
 0xfa4   : > { %2367 = vadd.xlane.f32.xlu1 %v2366_v30 }
0x102d   : > { %v2368_v31 = vpop.xlane.xlu1 %2367 }
0x102e   : > { %v2369_v32 = vmul.f32 0.0078125, %v2368_v31 }
0x1030   : > { %v2370_v33 = vadd.f32 1e-05, %v2369_v32 }
0x1032   : > { %3106 = vrsqrt.f32 %v2370_v33 }
0x103f   : > { %v3107_v34 = vpop.eup %3106 }
0x1040   : > { %v2372_v36 = vmul.f32 %v3107_v34, %v2365_v29 }
0x1042   : > { %v2379_v37 = vmul.f32 %v2696_v35, %v2372_v36  ;;  %2391 = sbr.rel (%p2698_p10) target bundleno = 4168 (0x1048), region = 112 }
0x1044   : > { %v2386_v38 = vadd.f32 %v2697_v59, %v2379_v37 }
0x1046   : > { %2387 = vst [vmem:[#allocation2] sm:$0xff] %v2386_v38 }
0x1047   : > { %2392 = vst [vmem:[%s783_s21] sm:$0xff] %v2386_v38 }
0x1048 PF: > { %s4311_s12 = sld [smem:[#allocation23_spill]]  ;;  %s2407_s30 = sshll.u32 %s783_s21, 4  ;;  %s2408_s30 = int_to_ptr.vmem [resolvable:$true] %s2407_s30 }
0x1049   : > { %s4313_s2 = sld [smem:[#allocation49_spill]]  ;;  %s4314_s8 = sand.u32 1, %s3338_s22  }
0x104a   : > { %s2394_s5 = scalar_lea.sflag [#allocation6], %s4314_s8  ;;  %s3246_s11 = scalar_lea.vmem %s2408_s30, 128 }
0x104b   : > { %p3247_p3 = scmp.ne.s32.totalorder %s2408_s30, %s3246_s11  ;;  %s3394_s15 = smov [#allocation13]  }
0x104c   : > { %s3250_s7 = sshll.u32 %s3394_s15, 4  ;;  %s3251_s7 = int_to_ptr.vmem [resolvable:$false] %s3250_s7 }
0x104d   : > { %p3248_p1 = pnand %p3247_p3, %p3624_p4  ;;  %s3252_s3 = scalar_lea.vmem %s3251_s7, 256 }
0x104e   : > { %s2700_s26 = sshll.u32 %s4311_s12, 7  ;;  %p3253_p5 = scmp.lt.s32.totalorder %s2408_s30, %s3251_s7 }
0x104f   : > { %s2405_s27 = scalar_lea.hbm %s4313_s2, %s2700_s26  ;;  %p3249_p0 = pneg %p3248_p1 }
0x1050   : > { %p3254_p8 = scmp.lt.s32.totalorder %s3252_s3, %s3246_s11 }
0x1052   : > { %p3255_p7 = por %p3254_p8, %p3253_p5 }
0x1054   : > { %p3256_p12 = pnand %p3255_p7, %p3249_p0 }
0x1056   : > { %3259 = shalt.err (!%p3256_p12)
}
0x1057   : > { %s3260_s6 = scalar_lea.hbm %s2405_s27, 128  ;;  %s3264_s17 = scalar_lea.hbm %s4313_s2, 256 }
0x1058   : > { %p3261_p9 = scmp.ne.s32.totalorder %s2405_s27, %s3260_s6  ;;  %p3265_p13 = scmp.lt.s32.totalorder %s2405_s27, %s4313_s2 }
0x1059   : > { %p3266_p2 = scmp.lt.s32.totalorder %s3264_s17, %s3260_s6 }
0x105a   : > { %p3262_p11 = pnand %p3261_p9, %p3624_p4 }
0x105b   : > { %p3267_p10 = por %p3266_p2, %p3265_p13 }
0x105c   : > { %p3263_p6 = pneg %p3262_p11 }
0x105e   : > { %p3268_p3 = pnand %p3267_p10, %p3263_p6 }
0x1060   : > { %3271 = shalt.err (!%p3268_p3)
}
0x1061   : > { %2959 = dma.vmem_to_hbm [thread:$0]  (%p3624_p4), %s2408_s30, 128, %s2405_s27, %s2394_s5  }
0x1062 PF: > { %s4315_s0 = sld [smem:[#allocation26_spill]] }
0x1063   : > { %s4316_s18 = sld [smem:[#allocation18_spill]] }
0x1064   : > { %s4317_s10 = sld [smem:[#allocation31_spill]] }
0x1068   : > { %p2985_p1 = scmp.ge.s32.totalorder %s4315_s0, 2 }
0x1069   : > { %s2419_s24 = sand.u32 1, %s4316_s18  }
0x106a   : > { %p4318_p0 = scmp.ne.s32.totalorder %s4317_s10, 0  ;;  %s2420_s13 = scalar_lea.sflag [#allocation6], %s2419_s24 }
0x106c   : > { %p2979_p5 = pnand %p2985_p1, %p4318_p0 }
0x106e   : > { %p2980_p8 = pneg %p2979_p5 }
0x1070   : > { %3329 = dma.done.wait (%p2980_p8), %s2420_s13, 128  }
0x1071   : > { %3331 = vsyncadd (%p2980_p8), %s2420_s13, 4294967168  ;;  %s36_s0 = sadd.s32 1, %s4315_s0   ;;  %s4319_s19 = sld [smem:[#allocation19_spill]] }
0x1072   : > { %p33_p7 = scmp.ge.s32.totalorder %s36_s0, 6   ;;  %s4320_s23 = sld [smem:[#allocation32_spill]] }
0x1073   : > { %s4321_s24 = sld [smem:[#allocation20_spill]]  ;;  %s4328_s21 = smov %s3338_s22 }
0x1074   : > { %s4322_s25 = sld [smem:[#allocation21_spill]] }
0x1075   : > { %s4323_s26 = sld [smem:[#allocation28_spill]]  ;;  %35 = sbr.rel (!%p33_p7) target bundleno = 30 (0x1e), region = 204 }
0x1076   : > { %s4324_s27 = sld [smem:[#allocation24_spill]] }
0x1077   : > { %s4325_s28 = sld [smem:[#allocation25_spill]]  ;;  %s4329_s22 = smov %s4319_s19 }
0x1078   : > { %s4326_s29 = sld [smem:[#allocation27_spill]] }
0x1079   : > { %s4327_s30 = sld [smem:[#allocation29_spill]] }
0x107a   :  { %2425 = vsyncpa [#allocation5], 1 }
0x107b   :  { %2427 = vsyncpa [#allocation5 + $0x1], 1 }
0x107c   :  { %2428 = vsyncpa [#allocation8], 1 }
0x107d   :  { %2430 = vsyncpa [#allocation8 + $0x1], 1 }
0x107e   :  { %2431 = vsyncpa [#allocation11], 1 }
0x107f   :  { %2433 = vsyncpa [#allocation11 + $0x1], 1 }
0x1080   :  { %2434 = vsyncpa [#allocation6], 1 }
0x1081   :  { %2436 = vsyncpa [#allocation6 + $0x1], 1 }

</bundles_post_ra>
